<compile_context>
chip_gen: v7x
topology: tpu7x:2x2x1
jax: 0.10.0
libtpu: 0.0.40
codegen_flags: <defaults>
</compile_context>

<pallas_src>
import functools

import jax
import jax.numpy as jnp
from jax.experimental import pallas as pl
from jax.experimental.pallas import tpu as pltpu

LANE = 128


def _vmem_limit_bytes():
    # ~half of physical VMEM: 32 MiB on v7x (64 MiB parts), 64 MiB on v5e/v6e
    # (128 MiB parts); conservative 48 MiB fallback if the query is unavailable.
    try:
        cap = int(pltpu.get_tpu_info().vmem_capacity_bytes)
        return int(min(max(cap // 2, 32 << 20), 100 << 20))
    except Exception:
        return 48 << 20


VMEM_LIMIT = _vmem_limit_bytes()


def _round_up(x, m):
    return (x + m - 1) // m * m


def _pick_tile(dim):
    # dim is a multiple of 128: prefer 512/256 (feeds the v6e/v7x 256-wide MXU),
    # fall back to 128 (v5e MXU width).
    for c in (512, 256, 128):
        if dim % c == 0:
            return c
    return dim


def _pick_tile_m(mp):
    for c in (512, 256, 128):
        if mp % c == 0:
            return c
    return mp  # small-M layers: one full-height tile (mp is a multiple of 16)


# ----------------------------------------------------------------------------
# Kernel 1a: single-K-step matmul + bias + activation (all conv layers here)
# ----------------------------------------------------------------------------
def _mm_single_kernel(x_ref, w_ref, b_ref, o_ref, *, act):
    r = jnp.dot(x_ref[...], w_ref[...], preferred_element_type=jnp.float32)
    r = r + b_ref[...]                       # f32 epilogue
    if act == "relu":
        r = jnp.maximum(r, 0.0)
    elif act == "sigmoid":
        r = jax.nn.sigmoid(r)
    o_ref[...] = r.astype(o_ref.dtype)


# ----------------------------------------------------------------------------
# Kernel 1b: K-tiled fallback (only used when K > 2048)
# ----------------------------------------------------------------------------
def _mm_ktiled_kernel(x_ref, w_ref, b_ref, o_ref, acc_ref, *, act):
    k = pl.program_id(2)

    @pl.when(k == 0)
    def _():
        acc_ref[...] = jnp.zeros_like(acc_ref)

    acc_ref[...] += jnp.dot(x_ref[...], w_ref[...],
                            preferred_element_type=jnp.float32)

    @pl.when(k == pl.num_programs(2) - 1)
    def _():
        r = acc_ref[...] + b_ref[...]
        if act == "relu":
            r = jnp.maximum(r, 0.0)
        elif act == "sigmoid":
            r = jax.nn.sigmoid(r)
        o_ref[...] = r.astype(o_ref.dtype)


def pallas_matmul_bias_act(x, w, b, act, out_dtype):
    """act(x @ w + b):  x (M,K), w (K,N), b (N,) -> (M,N) in out_dtype."""
    M, K = x.shape
    N = w.shape[-1]
    Mp = _round_up(M, 16)            # sublane-friendly (bf16 packing), no 128 pad
    Np = _round_up(N, LANE)          # lane-dense (unmasked) output stores
    tm, tn = _pick_tile_m(Mp), _pick_tile(Np)

    xp = jnp.pad(x.astype(jnp.bfloat16), ((0, Mp - M), (0, 0)))
    wp = jnp.pad(w.astype(jnp.bfloat16), ((0, 0), (0, Np - N)))
    bp = jnp.pad(b.astype(jnp.float32), (0, Np - N)).reshape(1, Np)

    if K <= 2048:
        # Single K step: full-(unpadded)-K blocks, no accumulator scratch.
        out = pl.pallas_call(
            functools.partial(_mm_single_kernel, act=act),
            out_shape=jax.ShapeDtypeStruct((Mp, Np), out_dtype),
            grid_spec=pltpu.PrefetchScalarGridSpec(
                num_scalar_prefetch=0,
                grid=(Mp // tm, Np // tn),
                in_specs=[
                    pl.BlockSpec((tm, K), lambda i, j: (i, 0)),
                    pl.BlockSpec((K, tn), lambda i, j: (0, j)),
                    pl.BlockSpec((1, tn), lambda i, j: (0, j)),
                ],
                out_specs=pl.BlockSpec((tm, tn), lambda i, j: (i, j)),
            ),
            compiler_params=pltpu.CompilerParams(
                dimension_semantics=("parallel", "parallel"),
                vmem_limit_bytes=VMEM_LIMIT,
            ),
        )(xp, wp, bp)
    else:
        Kp = _round_up(K, LANE)
        tk = _pick_tile(Kp)
        xp = jnp.pad(xp, ((0, 0), (0, Kp - K)))
        wpk = jnp.pad(wp, ((0, Kp - K), (0, 0)))
        out = pl.pallas_call(
            functools.partial(_mm_ktiled_kernel, act=act),
            out_shape=jax.ShapeDtypeStruct((Mp, Np), out_dtype),
            grid_spec=pltpu.PrefetchScalarGridSpec(
                num_scalar_prefetch=0,
                grid=(Mp // tm, Np // tn, Kp // tk),
                in_specs=[
                    pl.BlockSpec((tm, tk), lambda i, j, k: (i, k)),
                    pl.BlockSpec((tk, tn), lambda i, j, k: (k, j)),
                    pl.BlockSpec((1, tn), lambda i, j, k: (0, j)),
                ],
                out_specs=pl.BlockSpec((tm, tn), lambda i, j, k: (i, j)),
                scratch_shapes=[pltpu.VMEM((tm, tn), jnp.float32)],
            ),
            compiler_params=pltpu.CompilerParams(
                dimension_semantics=("parallel", "parallel", "arbitrary"),
                vmem_limit_bytes=VMEM_LIMIT,
            ),
        )(xp, wpk, bp)
    return out[:M, :N]


# ----------------------------------------------------------------------------
# Kernel 2: encoder conv2 fused with the vector quantizer
# ----------------------------------------------------------------------------
def _conv_vq_kernel(cols_ref, w_ref, b_ref, cb_ref, e2_ref,
                    q_ref, idx_ref, loss_ref, *, n_rows, n_codes, tm):
    i = pl.program_id(0)

    # z = cols @ w + b  (bf16 MXU operands, f32 epilogue), no activation
    z = jnp.dot(cols_ref[...], w_ref[...], preferred_element_type=jnp.float32)
    z = z + b_ref[...]                                 # (tm, Dp) f32

    e = cb_ref[...]                                    # (Kcp, Dp) f32, resident
    kcp = e.shape[0]

    # distances: ||z||^2 + ||e||^2 - 2 z.e   (z.e in f32 -> exact argmin)
    z2 = jnp.sum(z * z, axis=1, keepdims=True)         # (tm, 1)
    ze = jax.lax.dot_general(z, e, (((1,), (1,)), ((), ())),
                             preferred_element_type=jnp.float32)  # (tm, Kcp)
    dist = z2 + e2_ref[...] - 2.0 * ze
    col = jax.lax.broadcasted_iota(jnp.int32, dist.shape, 1)
    dist = jnp.where(col < n_codes, dist, 1e30)         # mask padded codes

    # argmin (first minimal index, matching torch.argmin)
    dmin = jnp.min(dist, axis=1, keepdims=True)
    idx = jnp.min(jnp.where(dist <= dmin, col, kcp), axis=1)      # (tm,)

    # codebook gather via one-hot matmul (exact, f32)
    onehot = (col == idx[:, None]).astype(jnp.float32)
    q = jnp.dot(onehot, e, preferred_element_type=jnp.float32)    # (tm, Dp)

    q_ref[...] = q.astype(q_ref.dtype)
    idx_ref[...] = jnp.broadcast_to(idx[:, None], idx_ref.shape).astype(jnp.int32)

    # per-tile VQ loss partial (reduced in JAX -> M axis stays "parallel")
    rows = jax.lax.broadcasted_iota(jnp.int32, (tm, 1), 0) + i * tm
    valid = (rows < n_rows).astype(jnp.float32)
    diff = q - z
    part = jnp.sum(jnp.sum(diff * diff, axis=1, keepdims=True) * valid)
    loss_ref[...] = jnp.full(loss_ref.shape, part, jnp.float32)


def pallas_conv_vq(cols, w_mat, b, codebook, n_rows, commitment_cost):
    """Fused (cols @ w + b) -> vector-quantize.  Returns (q_bf16, idx, loss)."""
    M, K = cols.shape
    Kc, D = codebook.shape
    Mp = _round_up(M, 16)
    Dp, Kcp = _round_up(D, LANE), _round_up(Kc, LANE)
    tm = _pick_tile_m(Mp)
    n_tiles = Mp // tm

    colsp = jnp.pad(cols.astype(jnp.bfloat16), ((0, Mp - M), (0, 0)))
    wp = jnp.pad(w_mat.astype(jnp.bfloat16), ((0, 0), (0, Dp - D)))
    bp = jnp.pad(b.astype(jnp.float32), (0, Dp - D)).reshape(1, Dp)
    cb32 = codebook.astype(jnp.float32)
    cbp = jnp.pad(cb32, ((0, Kcp - Kc), (0, Dp - D)))
    e2p = jnp.pad(jnp.sum(cb32 * cb32, axis=1), (0, Kcp - Kc)).reshape(1, Kcp)

    kernel = functools.partial(_conv_vq_kernel, n_rows=n_rows, n_codes=Kc, tm=tm)

    q, idx, loss_part = pl.pallas_call(
        kernel,
        out_shape=(
            jax.ShapeDtypeStruct((Mp, Dp), jnp.bfloat16),        # quantized (bf16)
            jax.ShapeDtypeStruct((Mp, LANE), jnp.int32),          # lane-dense idx
            jax.ShapeDtypeStruct((n_tiles * 8, LANE), jnp.float32),  # loss partials
        ),
        grid_spec=pltpu.PrefetchScalarGridSpec(
            num_scalar_prefetch=0,
            grid=(n_tiles,),
            in_specs=[
                pl.BlockSpec((tm, K), lambda i: (i, 0)),
                pl.BlockSpec((K, Dp), lambda i: (0, 0)),
                pl.BlockSpec((1, Dp), lambda i: (0, 0)),
                pl.BlockSpec((Kcp, Dp), lambda i: (0, 0)),       # codebook resident
                pl.BlockSpec((1, Kcp), lambda i: (0, 0)),        # hoisted ||e||^2
            ],
            out_specs=(
                pl.BlockSpec((tm, Dp), lambda i: (i, 0)),
                pl.BlockSpec((tm, LANE), lambda i: (i, 0)),
                pl.BlockSpec((8, LANE), lambda i: (i, 0)),
            ),
        ),
        compiler_params=pltpu.CompilerParams(
            dimension_semantics=("parallel",),        # M axis splittable (v7x)
            vmem_limit_bytes=VMEM_LIMIT,
        ),
    )(colsp, wp, bp, cbp, e2p)

    loss = jnp.sum(loss_part[::8, 0]) * ((1.0 + commitment_cost) / float(n_rows * D))
    return q[:M, :D], idx[:M, 0], loss


# ----------------------------------------------------------------------------
# Conv lowering (im2col / phase-folded deconv glue in JAX, matmuls in Pallas)
# ----------------------------------------------------------------------------
def _im2col(x_nhwc, k, stride, pad):
    """x is already bf16 (cast fused here); returns (B*Ho*Wo, k*k*C) cols."""
    B, H, W, C = x_nhwc.shape
    xp = jnp.pad(x_nhwc, ((0, 0), (pad, pad), (pad, pad), (0, 0)))
    Ho = (H + 2 * pad - k) // stride + 1
    Wo = (W + 2 * pad - k) // stride + 1
    patches = []
    for i in range(k):
        for j in range(k):
            patches.append(
                xp[:, i:i + stride * Ho:stride, j:j + stride * Wo:stride, :])
    cols = jnp.concatenate(patches, axis=-1)
    return cols.reshape(B * Ho * Wo, k * k * C), Ho, Wo


def conv2d(x_nhwc, w_hwio, b, *, stride, pad, act, out_dtype):
    k = w_hwio.shape[0]
    cout = w_hwio.shape[-1]
    cols, Ho, Wo = _im2col(x_nhwc, k, stride, pad)
    out = pallas_matmul_bias_act(cols, w_hwio.reshape(-1, cout), b, act, out_dtype)
    B = x_nhwc.shape[0]
    return out.reshape(B, Ho, Wo, cout)


def _fold_deconv_weight(wt):
    """wt: (4,4,Cin,Cout) ConvTranspose2d weight indexed [ky,kx,ci,co]
    (a PyTorch (Cin,Cout,4,4) weight maps via permute(2,3,0,1)).
    Returns the (9*Cin, 4*Cout) folded weight over a 3x3 neighborhood with the
    4 sub-pixel phases (py,px) stacked along the output columns."""
    # o[2m+py] = sum_dy z[m+dy] * wt[py - 2*dy + 1]  (valid kernel taps only)
    kmap = {(0, -1): 3, (0, 0): 1, (1, 0): 2, (1, 1): 0}
    cin, cout = wt.shape[2], wt.shape[3]
    wf = jnp.zeros((3, 3, cin, 2, 2, cout), wt.dtype)
    for py in range(2):
        for px in range(2):
            for dy in (-1, 0, 1):
                for dx in (-1, 0, 1):
                    if (py, dy) in kmap and (px, dx) in kmap:
                        wf = wf.at[dy + 1, dx + 1, :, py, px, :].set(
                            wt[kmap[(py, dy)], kmap[(px, dx)]])
    return wf.reshape(9 * cin, 4 * cout)


def conv_transpose2d_s2k4p1(x_nhwc, wt, b, *, act, out_dtype):
    """ConvTranspose2d(kernel=4, stride=2, padding=1): ONE matmul over a shared
    3x3-neighborhood im2col with the 4 sub-pixel phases folded along N."""
    B, H, W, C = x_nhwc.shape
    cout = wt.shape[-1]
    cols, _, _ = _im2col(x_nhwc, 3, 1, 1)          # (B*H*W, 9*C)
    wf = _fold_deconv_weight(wt)                   # (9*C, 4*Cout)
    bf = jnp.tile(b, 4)                            # bias per (phase, cout) column
    out = pallas_matmul_bias_act(cols, wf, bf, act, out_dtype)   # (B*H*W, 4*Cout)
    out = out.reshape(B, H, W, 2, 2, cout)
    # TODO(synk): fold this sub-pixel interleave into the next consumer's gather
    out = jnp.transpose(out, (0, 1, 3, 2, 4, 5)).reshape(B, 2 * H, 2 * W, cout)
    return out


# ----------------------------------------------------------------------------
# VQVAE forward
# ----------------------------------------------------------------------------
def init_params(key, hidden_dim, embedding_dim, num_embeddings):
    ks = jax.random.split(key, 9)
    s = 0.1
    return {
        # Encoder: Conv2d(1, hidden, 4, s=2, p=1), Conv2d(hidden, emb, 4, s=2, p=1)
        "enc_w1": s * jax.random.normal(ks[0], (4, 4, 1, hidden_dim), jnp.float32),
        "enc_b1": s * jax.random.normal(ks[1], (hidden_dim,), jnp.float32),
        "enc_w2": s * jax.random.normal(ks[2], (4, 4, hidden_dim, embedding_dim), jnp.float32),
        "enc_b2": s * jax.random.normal(ks[3], (embedding_dim,), jnp.float32),
        # Codebook: Embedding(num_embeddings, embedding_dim) ~ U(-1/K, 1/K)
        "codebook": jax.random.uniform(
            ks[4], (num_embeddings, embedding_dim), jnp.float32,
            minval=-1.0 / num_embeddings, maxval=1.0 / num_embeddings),
        # Decoder ConvTranspose2d weights stored as (kH, kW, Cin, Cout)
        "dec_w1": s * jax.random.normal(ks[5], (4, 4, embedding_dim, hidden_dim), jnp.float32),
        "dec_b1": s * jax.random.normal(ks[6], (hidden_dim,), jnp.float32),
        "dec_w2": s * jax.random.normal(ks[7], (4, 4, hidden_dim, 1), jnp.float32),
        "dec_b2": s * jax.random.normal(ks[8], (1,), jnp.float32),
    }


def vqvae_forward(params, x_nchw, commitment_cost):
    # NCHW (PyTorch convention) -> NHWC, single bf16 cast fused into the prologue
    x = jnp.transpose(x_nchw, (0, 2, 3, 1)).astype(jnp.bfloat16)
    B = x.shape[0]

    # --- Encoder ---
    h = conv2d(x, params["enc_w1"], params["enc_b1"], stride=2, pad=1,
               act="relu", out_dtype=jnp.bfloat16)

    # --- Encoder conv2 fused with the vector quantizer ---
    cols2, Hq, Wq = _im2col(h, 4, 2, 1)
    D = params["enc_w2"].shape[-1]
    q_flat, idx_flat, vq_loss = pallas_conv_vq(
        cols2, params["enc_w2"].reshape(-1, D), params["enc_b2"],
        params["codebook"], B * Hq * Wq, commitment_cost)
    quantized = q_flat.reshape(B, Hq, Wq, D)   # straight-through forward value
    indices = idx_flat.reshape(B, Hq, Wq)

    # --- Decoder (phase-folded transposed convs) ---
    d = conv_transpose2d_s2k4p1(quantized, params["dec_w1"], params["dec_b1"],
                                act="relu", out_dtype=jnp.bfloat16)
    x_recon = conv_transpose2d_s2k4p1(d, params["dec_w2"], params["dec_b2"],
                                      act="sigmoid", out_dtype=jnp.float32)

    x_recon = jnp.transpose(x_recon, (0, 3, 1, 2))   # back to NCHW
    return x_recon, vq_loss, indices


if __name__ == "__main__":
    hidden_dim = 32
    embedding_dim = 16
    num_embeddings = 32
    commitment_cost = 0.25

    key = jax.random.PRNGKey(0)
    k_params, k_x = jax.random.split(key)
    params = init_params(k_params, hidden_dim, embedding_dim, num_embeddings)

    # input image batch, NCHW like PyTorch: [B, 1, 16, 16]
    x = jax.random.uniform(k_x, (2, 1, 16, 16), jnp.float32)

    fwd = jax.jit(functools.partial(vqvae_forward, commitment_cost=commitment_cost))
    x_recon, vq_loss, indices = fwd(params, x)
    jax.block_until_ready((x_recon, vq_loss, indices))

    assert x_recon.shape == (2, 1, 16, 16)
    assert indices.shape == (2, 4, 4)
    assert vq_loss.shape == ()
    assert bool(jnp.all(jnp.isfinite(x_recon)))
    assert bool(jnp.all(x_recon >= 0.0) and jnp.all(x_recon <= 1.0))
    assert bool(jnp.isfinite(vq_loss)) and float(vq_loss) >= 0.0
    assert bool(jnp.all(indices >= 0) and jnp.all(indices < num_embeddings))

    print("KERNEL_OK")
</pallas_src>

<mosaic_0001>
module attributes {stable_mosaic.version = 11 : i64} {
  func.func @_mm_single_kernel(%arg0: i32, %arg1: i32, %arg2: memref<128x16xbf16, #tpu.memory_space<vmem>>, %arg3: memref<16x128xbf16, #tpu.memory_space<vmem>>, %arg4: memref<1x128xf32, #tpu.memory_space<vmem>>, %arg5: memref<128x128xbf16, #tpu.memory_space<vmem>>) attributes {dimension_semantics = [#tpu.dimension_semantics<parallel>, #tpu.dimension_semantics<parallel>], iteration_bounds = array<i64: 1, 1>, scalar_prefetch = 0 : i64, scratch_operands = 0 : i64, tpu.core_type = #tpu.core_type<tc>, window_params = [{transform_indices = @transform_0, window_bounds = array<i64: 128, 16>}, {transform_indices = @transform_1, window_bounds = array<i64: 16, 128>}, {transform_indices = @transform_2, window_bounds = array<i64: 1, 128>}, {transform_indices = @transform_3, window_bounds = array<i64: 128, 128>}]} {
    %c0 = arith.constant 0 : index
    %c0_0 = arith.constant 0 : index
    %0 = vector.load %arg2[%c0, %c0_0] : memref<128x16xbf16, #tpu.memory_space<vmem>>, vector<128x16xbf16>
    %c0_1 = arith.constant 0 : index
    %c0_2 = arith.constant 0 : index
    %1 = vector.load %arg3[%c0_1, %c0_2] : memref<16x128xbf16, #tpu.memory_space<vmem>>, vector<16x128xbf16>
    %cst = arith.constant dense<0.000000e+00> : vector<128x128xf32>
    %2 = tpu.matmul %0, %1, %cst {dimension_numbers = #tpu.dot_dimension_numbers<[1], [0], [0], [1], [0, 0, 1, 1], [], []>} : vector<128x16xbf16>, vector<16x128xbf16>, vector<128x128xf32> -> vector<128x128xf32>
    %c0_3 = arith.constant 0 : index
    %c0_4 = arith.constant 0 : index
    %3 = vector.load %arg4[%c0_3, %c0_4] : memref<1x128xf32, #tpu.memory_space<vmem>>, vector<1x128xf32>
    %4 = vector.broadcast %3 : vector<1x128xf32> to vector<128x128xf32>
    %5 = arith.addf %2, %4 : vector<128x128xf32>
    %cst_5 = arith.constant 0.000000e+00 : f32
    %6 = vector.broadcast %cst_5 : f32 to vector<128x128xf32>
    %7 = arith.maximumf %5, %6 : vector<128x128xf32>
    %8 = arith.truncf %7 : vector<128x128xf32> to vector<128x128xbf16>
    %c0_6 = arith.constant 0 : index
    %c0_7 = arith.constant 0 : index
    %9 = vector.load %arg5[%c0_6, %c0_7] : memref<128x128xbf16, #tpu.memory_space<vmem>>, vector<128x128xbf16>
    tpu.vector_store %arg5[%c0_6, %c0_7], %8 {strides = array<i32>} : memref<128x128xbf16, #tpu.memory_space<vmem>>, vector<128x128xbf16>,
    return
  }
  func.func @transform_0(%arg0: i32, %arg1: i32) -> (i32, i32) {
    %c0_i32 = arith.constant 0 : i32
    %c0_i32_0 = arith.constant 0 : i32
    return %arg0, %c0_i32 : i32, i32
  }
  func.func @transform_1(%arg0: i32, %arg1: i32) -> (i32, i32) {
    %c0_i32 = arith.constant 0 : i32
    %c0_i32_0 = arith.constant 0 : i32
    return %c0_i32, %arg1 : i32, i32
  }
  func.func @transform_2(%arg0: i32, %arg1: i32) -> (i32, i32) {
    %c0_i32 = arith.constant 0 : i32
    %c0_i32_0 = arith.constant 0 : i32
    return %c0_i32, %arg1 : i32, i32
  }
  func.func @transform_3(%arg0: i32, %arg1: i32) -> (i32, i32) {
    %c0_i32 = arith.constant 0 : i32
    return %arg0, %arg1 : i32, i32
  }
}

module attributes {stable_mosaic.version = 11 : i64} {
  func.func @_conv_vq_kernel(%arg0: i32, %arg1: memref<32x512xbf16, #tpu.memory_space<vmem>>, %arg2: memref<512x128xbf16, #tpu.memory_space<vmem>>, %arg3: memref<1x128xf32, #tpu.memory_space<vmem>>, %arg4: memref<128x128xf32, #tpu.memory_space<vmem>>, %arg5: memref<1x128xf32, #tpu.memory_space<vmem>>, %arg6: memref<32x128xbf16, #tpu.memory_space<vmem>>, %arg7: memref<32x128xi32, #tpu.memory_space<vmem>>, %arg8: memref<8x128xf32, #tpu.memory_space<vmem>>) attributes {dimension_semantics = [#tpu.dimension_semantics<parallel>], iteration_bounds = array<i64: 1>, scalar_prefetch = 0 : i64, scratch_operands = 0 : i64, tpu.core_type = #tpu.core_type<tc>, window_params = [{transform_indices = @transform_0, window_bounds = array<i64: 32, 512>}, {pipeline_mode = #tpu.pipeline_mode<synchronous>, transform_indices = @transform_1, window_bounds = array<i64: 512, 128>}, {pipeline_mode = #tpu.pipeline_mode<synchronous>, transform_indices = @transform_2, window_bounds = array<i64: 1, 128>}, {pipeline_mode = #tpu.pipeline_mode<synchronous>, transform_indices = @transform_3, window_bounds = array<i64: 128, 128>}, {pipeline_mode = #tpu.pipeline_mode<synchronous>, transform_indices = @transform_4, window_bounds = array<i64: 1, 128>}, {transform_indices = @transform_5, window_bounds = array<i64: 32, 128>}, {transform_indices = @transform_6, window_bounds = array<i64: 32, 128>}, {transform_indices = @transform_7, window_bounds = array<i64: 8, 128>}]} {
    %c0 = arith.constant 0 : index
    %c0_0 = arith.constant 0 : index
    %0 = vector.load %arg1[%c0, %c0_0] : memref<32x512xbf16, #tpu.memory_space<vmem>>, vector<32x512xbf16>
    %c0_1 = arith.constant 0 : index
    %c0_2 = arith.constant 0 : index
    %1 = vector.load %arg2[%c0_1, %c0_2] : memref<512x128xbf16, #tpu.memory_space<vmem>>, vector<512x128xbf16>
    %cst = arith.constant dense<0.000000e+00> : vector<32x128xf32>
    %2 = tpu.matmul %0, %1, %cst {dimension_numbers = #tpu.dot_dimension_numbers<[1], [0], [0], [1], [0, 0, 1, 1], [], []>} : vector<32x512xbf16>, vector<512x128xbf16>, vector<32x128xf32> -> vector<32x128xf32>
    %c0_3 = arith.constant 0 : index
    %c0_4 = arith.constant 0 : index
    %3 = vector.load %arg3[%c0_3, %c0_4] : memref<1x128xf32, #tpu.memory_space<vmem>>, vector<1x128xf32>
    %4 = vector.broadcast %3 : vector<1x128xf32> to vector<32x128xf32>
    %5 = arith.addf %2, %4 : vector<32x128xf32>
    %c0_5 = arith.constant 0 : index
    %c0_6 = arith.constant 0 : index
    %6 = vector.load %arg4[%c0_5, %c0_6] : memref<128x128xf32, #tpu.memory_space<vmem>>, vector<128x128xf32>
    %7 = arith.mulf %5, %5 : vector<32x128xf32>
    %cst_7 = arith.constant dense<0.000000e+00> : vector<32xf32>
    %8 = vector.multi_reduction <add>, %7, %cst_7 [1] : vector<32x128xf32> to vector<32xf32>
    %9 = vector.shape_cast %8 : vector<32xf32> to vector<32x1xf32>
    %cst_8 = arith.constant dense<0.000000e+00> : vector<32x128xf32>
    %10 = tpu.matmul %5, %6, %cst_8 {dimension_numbers = #tpu.dot_dimension_numbers<[1], [1], [0], [0], [0, 0, 1, 0], [], []>} : vector<32x128xf32>, vector<128x128xf32>, vector<32x128xf32> -> vector<32x128xf32>
    %c0_9 = arith.constant 0 : index
    %c0_10 = arith.constant 0 : index
    %11 = vector.load %arg5[%c0_9, %c0_10] : memref<1x128xf32, #tpu.memory_space<vmem>>, vector<1x128xf32>
    %12 = vector.broadcast %9 : vector<32x1xf32> to vector<32x128xf32>
    %13 = vector.broadcast %11 : vector<1x128xf32> to vector<32x128xf32>
    %14 = arith.addf %12, %13 : vector<32x128xf32>
    %cst_11 = arith.constant 2.000000e+00 : f32
    %15 = vector.broadcast %cst_11 : f32 to vector<32x128xf32>
    %16 = arith.mulf %15, %10 : vector<32x128xf32>
    %17 = arith.subf %14, %16 : vector<32x128xf32>
    %18 = tpu.iota {dimensions = array<i32: 1>} : vector<32x128xi32>
    %c32_i32 = arith.constant 32 : i32
    %19 = vector.broadcast %c32_i32 : i32 to vector<32x128xi32>
    %20 = arith.cmpi slt, %18, %19 : vector<32x128xi32>
    %cst_12 = arith.constant 1.000000e+30 : f32
    %21 = vector.broadcast %cst_12 : f32 to vector<32x128xf32>
    %22 = arith.select %20, %17, %21 : vector<32x128xi1>, vector<32x128xf32>
    %cst_13 = arith.constant dense<0x7F800000> : vector<32xf32>
    %23 = vector.multi_reduction <minimumf>, %22, %cst_13 [1] : vector<32x128xf32> to vector<32xf32>
    %24 = vector.shape_cast %23 : vector<32xf32> to vector<32x1xf32>
    %25 = vector.broadcast %24 : vector<32x1xf32> to vector<32x128xf32>
    %26 = arith.cmpf ole, %22, %25 : vector<32x128xf32>
    %c128_i32 = arith.constant 128 : i32
    %27 = vector.broadcast %c128_i32 : i32 to vector<32x128xi32>
    %28 = arith.select %26, %18, %27 : vector<32x128xi1>, vector<32x128xi32>
    %cst_14 = arith.constant dense<2147483647> : vector<32xi32>
    %29 = vector.multi_reduction <minsi>, %28, %cst_14 [1] : vector<32x128xi32> to vector<32xi32>
    %30 = vector.shape_cast %29 : vector<32xi32> to vector<32x1xi32>
    %31 = vector.broadcast %30 : vector<32x1xi32> to vector<32x128xi32>
    %32 = arith.cmpi eq, %18, %31 : vector<32x128xi32>
    %33 = arith.extui %32 : vector<32x128xi1> to vector<32x128xi32>
    %34 = arith.sitofp %33 : vector<32x128xi32> to vector<32x128xf32>
    %cst_15 = arith.constant dense<0.000000e+00> : vector<32x128xf32>
    %35 = tpu.matmul %34, %6, %cst_15 {dimension_numbers = #tpu.dot_dimension_numbers<[1], [0], [0], [1], [0, 0, 1, 1], [], []>} : vector<32x128xf32>, vector<128x128xf32>, vector<32x128xf32> -> vector<32x128xf32>
    %36 = arith.truncf %35 : vector<32x128xf32> to vector<32x128xbf16>
    %c0_16 = arith.constant 0 : index
    %c0_17 = arith.constant 0 : index
    %37 = vector.load %arg6[%c0_16, %c0_17] : memref<32x128xbf16, #tpu.memory_space<vmem>>, vector<32x128xbf16>
    tpu.vector_store %arg6[%c0_16, %c0_17], %36 {strides = array<i32>} : memref<32x128xbf16, #tpu.memory_space<vmem>>, vector<32x128xbf16>,
    %38 = vector.shape_cast %29 : vector<32xi32> to vector<32x1xi32>
    %39 = vector.shape_cast %38 : vector<32x1xi32> to vector<32x1xi32>
    %40 = vector.broadcast %39 : vector<32x1xi32> to vector<32x128xi32>
    %c0_18 = arith.constant 0 : index
    %c0_19 = arith.constant 0 : index
    %41 = vector.load %arg7[%c0_18, %c0_19] : memref<32x128xi32, #tpu.memory_space<vmem>>, vector<32x128xi32>
    tpu.vector_store %arg7[%c0_18, %c0_19], %40 {strides = array<i32>} : memref<32x128xi32, #tpu.memory_space<vmem>>, vector<32x128xi32>,
    %42 = tpu.iota {dimensions = array<i32: 0>} : vector<32x1xi32>
    %c32_i32_20 = arith.constant 32 : i32
    %43 = arith.muli %arg0, %c32_i32_20 : i32
    %44 = vector.broadcast %43 : i32 to vector<32x1xi32>
    %45 = arith.addi %42, %44 : vector<32x1xi32>
    %c32_i32_21 = arith.constant 32 : i32
    %46 = vector.broadcast %c32_i32_21 : i32 to vector<32x1xi32>
    %47 = arith.cmpi slt, %45, %46 : vector<32x1xi32>
    %48 = arith.extui %47 : vector<32x1xi1> to vector<32x1xi32>
    %49 = arith.sitofp %48 : vector<32x1xi32> to vector<32x1xf32>
    %50 = arith.subf %35, %5 : vector<32x128xf32>
    %51 = arith.mulf %50, %50 : vector<32x128xf32>
    %cst_22 = arith.constant dense<0.000000e+00> : vector<32xf32>
    %52 = vector.multi_reduction <add>, %51, %cst_22 [1] : vector<32x128xf32> to vector<32xf32>
    %53 = vector.shape_cast %52 : vector<32xf32> to vector<32x1xf32>
    %54 = arith.mulf %53, %49 : vector<32x1xf32>
    %55 = vector.shape_cast %54 : vector<32x1xf32> to vector<1x32x1xf32>
    %cst_23 = arith.constant dense<0.000000e+00> : vector<1xf32>
    %56 = vector.multi_reduction <add>, %55, %cst_23 [1, 2] : vector<1x32x1xf32> to vector<1xf32>
    %57 = vector.shape_cast %56 : vector<1xf32> to vector<1x1x1xf32>
    %58 = vector.extract %57[0, 0, 0] : f32 from vector<1x1x1xf32>
    %59 = vector.broadcast %58 : f32 to vector<8x128xf32>
    %c0_24 = arith.constant 0 : index
    %c0_25 = arith.constant 0 : index
    %60 = vector.load %arg8[%c0_24, %c0_25] : memref<8x128xf32, #tpu.memory_space<vmem>>, vector<8x128xf32>
    tpu.vector_store %arg8[%c0_24, %c0_25], %59 {strides = array<i32>} : memref<8x128xf32, #tpu.memory_space<vmem>>, vector<8x128xf32>,
    return
  }
  func.func @transform_0(%arg0: i32) -> (i32, i32) {
    %c0_i32 = arith.constant 0 : i32
    %c0_i32_0 = arith.constant 0 : i32
    return %arg0, %c0_i32 : i32, i32
  }
  func.func @transform_1(%arg0: i32) -> (i32, i32) {
    %c0_i32 = arith.constant 0 : i32
    %c0_i32_0 = arith.constant 0 : i32
    %c0_i32_1 = arith.constant 0 : i32
    return %c0_i32, %c0_i32_0 : i32, i32
  }
  func.func @transform_2(%arg0: i32) -> (i32, i32) {
    %c0_i32 = arith.constant 0 : i32
    %c0_i32_0 = arith.constant 0 : i32
    %c0_i32_1 = arith.constant 0 : i32
    return %c0_i32, %c0_i32_0 : i32, i32
  }
  func.func @transform_3(%arg0: i32) -> (i32, i32) {
    %c0_i32 = arith.constant 0 : i32
    %c0_i32_0 = arith.constant 0 : i32
    %c0_i32_1 = arith.constant 0 : i32
    return %c0_i32, %c0_i32_0 : i32, i32
  }
  func.func @transform_4(%arg0: i32) -> (i32, i32) {
    %c0_i32 = arith.constant 0 : i32
    %c0_i32_0 = arith.constant 0 : i32
    %c0_i32_1 = arith.constant 0 : i32
    return %c0_i32, %c0_i32_0 : i32, i32
  }
  func.func @transform_5(%arg0: i32) -> (i32, i32) {
    %c0_i32 = arith.constant 0 : i32
    %c0_i32_0 = arith.constant 0 : i32
    return %arg0, %c0_i32 : i32, i32
  }
  func.func @transform_6(%arg0: i32) -> (i32, i32) {
    %c0_i32 = arith.constant 0 : i32
    %c0_i32_0 = arith.constant 0 : i32
    return %arg0, %c0_i32 : i32, i32
  }
  func.func @transform_7(%arg0: i32) -> (i32, i32) {
    %c0_i32 = arith.constant 0 : i32
    %c0_i32_0 = arith.constant 0 : i32
    return %arg0, %c0_i32 : i32, i32
  }
}

module attributes {stable_mosaic.version = 11 : i64} {
  func.func @_mm_single_kernel(%arg0: i32, %arg1: i32, %arg2: memref<32x144xbf16, #tpu.memory_space<vmem>>, %arg3: memref<144x128xbf16, #tpu.memory_space<vmem>>, %arg4: memref<1x128xf32, #tpu.memory_space<vmem>>, %arg5: memref<32x128xbf16, #tpu.memory_space<vmem>>) attributes {dimension_semantics = [#tpu.dimension_semantics<parallel>, #tpu.dimension_semantics<parallel>], iteration_bounds = array<i64: 1, 1>, scalar_prefetch = 0 : i64, scratch_operands = 0 : i64, tpu.core_type = #tpu.core_type<tc>, window_params = [{transform_indices = @transform_0, window_bounds = array<i64: 32, 144>}, {transform_indices = @transform_1, window_bounds = array<i64: 144, 128>}, {transform_indices = @transform_2, window_bounds = array<i64: 1, 128>}, {transform_indices = @transform_3, window_bounds = array<i64: 32, 128>}]} {
    %c0 = arith.constant 0 : index
    %c0_0 = arith.constant 0 : index
    %0 = vector.load %arg2[%c0, %c0_0] : memref<32x144xbf16, #tpu.memory_space<vmem>>, vector<32x144xbf16>
    %c0_1 = arith.constant 0 : index
    %c0_2 = arith.constant 0 : index
    %1 = vector.load %arg3[%c0_1, %c0_2] : memref<144x128xbf16, #tpu.memory_space<vmem>>, vector<144x128xbf16>
    %cst = arith.constant dense<0.000000e+00> : vector<32x128xf32>
    %2 = tpu.matmul %0, %1, %cst {dimension_numbers = #tpu.dot_dimension_numbers<[1], [0], [0], [1], [0, 0, 1, 1], [], []>} : vector<32x144xbf16>, vector<144x128xbf16>, vector<32x128xf32> -> vector<32x128xf32>
    %c0_3 = arith.constant 0 : index
    %c0_4 = arith.constant 0 : index
    %3 = vector.load %arg4[%c0_3, %c0_4] : memref<1x128xf32, #tpu.memory_space<vmem>>, vector<1x128xf32>
    %4 = vector.broadcast %3 : vector<1x128xf32> to vector<32x128xf32>
    %5 = arith.addf %2, %4 : vector<32x128xf32>
    %cst_5 = arith.constant 0.000000e+00 : f32
    %6 = vector.broadcast %cst_5 : f32 to vector<32x128xf32>
    %7 = arith.maximumf %5, %6 : vector<32x128xf32>
    %8 = arith.truncf %7 : vector<32x128xf32> to vector<32x128xbf16>
    %c0_6 = arith.constant 0 : index
    %c0_7 = arith.constant 0 : index
    %9 = vector.load %arg5[%c0_6, %c0_7] : memref<32x128xbf16, #tpu.memory_space<vmem>>, vector<32x128xbf16>
    tpu.vector_store %arg5[%c0_6, %c0_7], %8 {strides = array<i32>} : memref<32x128xbf16, #tpu.memory_space<vmem>>, vector<32x128xbf16>,
    return
  }
  func.func @transform_0(%arg0: i32, %arg1: i32) -> (i32, i32) {
    %c0_i32 = arith.constant 0 : i32
    %c0_i32_0 = arith.constant 0 : i32
    return %arg0, %c0_i32 : i32, i32
  }
  func.func @transform_1(%arg0: i32, %arg1: i32) -> (i32, i32) {
    %c0_i32 = arith.constant 0 : i32
    %c0_i32_0 = arith.constant 0 : i32
    return %c0_i32, %arg1 : i32, i32
  }
  func.func @transform_2(%arg0: i32, %arg1: i32) -> (i32, i32) {
    %c0_i32 = arith.constant 0 : i32
    %c0_i32_0 = arith.constant 0 : i32
    return %c0_i32, %arg1 : i32, i32
  }
  func.func @transform_3(%arg0: i32, %arg1: i32) -> (i32, i32) {
    %c0_i32 = arith.constant 0 : i32
    return %arg0, %arg1 : i32, i32
  }
}

module attributes {stable_mosaic.version = 11 : i64} {
  func.func @_mm_single_kernel(%arg0: i32, %arg1: i32, %arg2: memref<128x288xbf16, #tpu.memory_space<vmem>>, %arg3: memref<288x128xbf16, #tpu.memory_space<vmem>>, %arg4: memref<1x128xf32, #tpu.memory_space<vmem>>, %arg5: memref<128x128xf32, #tpu.memory_space<vmem>>) attributes {dimension_semantics = [#tpu.dimension_semantics<parallel>, #tpu.dimension_semantics<parallel>], iteration_bounds = array<i64: 1, 1>, scalar_prefetch = 0 : i64, scratch_operands = 0 : i64, tpu.core_type = #tpu.core_type<tc>, window_params = [{transform_indices = @transform_0, window_bounds = array<i64: 128, 288>}, {transform_indices = @transform_1, window_bounds = array<i64: 288, 128>}, {transform_indices = @transform_2, window_bounds = array<i64: 1, 128>}, {transform_indices = @transform_3, window_bounds = array<i64: 128, 128>}]} {
    %c0 = arith.constant 0 : index
    %c0_0 = arith.constant 0 : index
    %0 = vector.load %arg2[%c0, %c0_0] : memref<128x288xbf16, #tpu.memory_space<vmem>>, vector<128x288xbf16>
    %c0_1 = arith.constant 0 : index
    %c0_2 = arith.constant 0 : index
    %1 = vector.load %arg3[%c0_1, %c0_2] : memref<288x128xbf16, #tpu.memory_space<vmem>>, vector<288x128xbf16>
    %cst = arith.constant dense<0.000000e+00> : vector<128x128xf32>
    %2 = tpu.matmul %0, %1, %cst {dimension_numbers = #tpu.dot_dimension_numbers<[1], [0], [0], [1], [0, 0, 1, 1], [], []>} : vector<128x288xbf16>, vector<288x128xbf16>, vector<128x128xf32> -> vector<128x128xf32>
    %c0_3 = arith.constant 0 : index
    %c0_4 = arith.constant 0 : index
    %3 = vector.load %arg4[%c0_3, %c0_4] : memref<1x128xf32, #tpu.memory_space<vmem>>, vector<1x128xf32>
    %4 = vector.broadcast %3 : vector<1x128xf32> to vector<128x128xf32>
    %5 = arith.addf %2, %4 : vector<128x128xf32>
    %6 = arith.negf %5 : vector<128x128xf32>
    %7 = math.exp %6 : vector<128x128xf32>
    %cst_5 = arith.constant 1.000000e+00 : f32
    %8 = vector.broadcast %cst_5 : f32 to vector<128x128xf32>
    %9 = arith.addf %8, %7 : vector<128x128xf32>
    %10 = arith.divf %8, %9 : vector<128x128xf32>
    %c0_6 = arith.constant 0 : index
    %c0_7 = arith.constant 0 : index
    %11 = vector.load %arg5[%c0_6, %c0_7] : memref<128x128xf32, #tpu.memory_space<vmem>>, vector<128x128xf32>
    tpu.vector_store %arg5[%c0_6, %c0_7], %10 {strides = array<i32>} : memref<128x128xf32, #tpu.memory_space<vmem>>, vector<128x128xf32>,
    return
  }
  func.func @transform_0(%arg0: i32, %arg1: i32) -> (i32, i32) {
    %c0_i32 = arith.constant 0 : i32
    %c0_i32_0 = arith.constant 0 : i32
    return %arg0, %c0_i32 : i32, i32
  }
  func.func @transform_1(%arg0: i32, %arg1: i32) -> (i32, i32) {
    %c0_i32 = arith.constant 0 : i32
    %c0_i32_0 = arith.constant 0 : i32
    return %c0_i32, %arg1 : i32, i32
  }
  func.func @transform_2(%arg0: i32, %arg1: i32) -> (i32, i32) {
    %c0_i32 = arith.constant 0 : i32
    %c0_i32_0 = arith.constant 0 : i32
    return %c0_i32, %arg1 : i32, i32
  }
  func.func @transform_3(%arg0: i32, %arg1: i32) -> (i32, i32) {
    %c0_i32 = arith.constant 0 : i32
    return %arg0, %arg1 : i32, i32
  }
}

</mosaic_0001>

<bundles_post_ra>
// kernel: vqvae_forward.4
= control target key start
LH: loop header
LB: loop body
LE: loop exit
PB: predicated region body
PF: predicated region fallthrough
CT: control target
= control target key end

     0   :  { %vm86_vm0 = vcmask 130048   ;;  %s525_s1 = inlined_call_operand.vmem [shape: bf16[16,128], index: 1, kind: input, shape index: {}]   ;;  %s526_s0 = inlined_call_operand.vmem [shape: bf16[128,16], index: 0, kind: input, shape index: {}]   ;;  %s527_s2 = inlined_call_operand.vmem [shape: f32[1,128], index: 2, kind: input, shape index: {}]   ;;  %s528_s3 = inlined_call_operand.vmem [shape: bf16[128,128], index: 3, kind: output, shape index: {}]  }
   0x1   :  { %v434_v0 = vld [vmem:[%s525_s1] sm:$0xff]   ;;  %v437_v3 = vld [vmem:[%s526_s0 + $0x8] sm:$0xff]   ;;  %v439_v5 = vld [vmem:[%s526_s0 + $0x10] sm:$0xff]  }
   0x2   :  { %v435_v1 = vld [vmem:[%s526_s0] sm:$0xff]   ;;  %414 = vmatprep.subr.bf16.mxu0 %v434_v0  ;;  %432 = vmatprep.subr.bf16.mxu1 %v434_v0  ;;  %v438_v4 = vld [vmem:[%s526_s0 + $0x28] sm:$0xff]   ;;  %v440_v6 = vld [vmem:[%s526_s0 + $0x30] sm:$0xff]  }
   0x3   :  { %v436_v2 = vld [vmem:[%s526_s0 + $0x20] sm:$0xff]   ;;  %415 = vmatpush3.bf16.msra.mxu0 %v434_v0  ;;  %433 = vmatpush3.bf16.msra.mxu1 %v434_v0  ;;  %v441_v7 = vld [vmem:[%s526_s0 + $0x18] sm:$0xff]  }
   0x4   :  { %416 = vmatprep.mubr.msk.bf16.mxu0 %vm86_vm0, %v435_v1  ;;  %424 = vmatprep.mubr.msk.bf16.mxu1 %vm86_vm0, %v436_v2  ;;  %v442_v8 = vld [vmem:[%s526_s0 + $0x38] sm:$0xff]   ;;  %v308_v9 = vld [vmem:[%s527_s2] ss:$0 sm:$0xff] }
   0x6   :  { %417 = vmatmul.mubr.msk.bf16.vlgmr.msra.gmra.mrb[0].mxu0 %vm86_vm0, %v437_v3  ;;  %425 = vmatmul.mubr.msk.bf16.vlgmr.msra.gmra.mrb[0].mxu1 %vm86_vm0, %v438_v4 }
   0x7   :  { %420 = vmatprep.mubr.msk.bf16.mxu0 %vm86_vm0, %v439_v5  ;;  %428 = vmatprep.mubr.msk.bf16.mxu1 %vm86_vm0, %v440_v6 }
   0xe   :  { %421 = vmatmul.mubr.msk.bf16.gmra.mrb[4].mxu0 %vm86_vm0, %v441_v7  ;;  %429 = vmatmul.mubr.msk.bf16.gmra.mrb[4].mxu1 %vm86_vm0, %v442_v8 }
  0xd9   :  { %v418_v10 = vpop.f32.mrb[0].mxu0  ;;  %v426_v11 = vpop.f32.mrb[0].mxu1 }
  0xda   :  { %v154_v12 = vadd.f32 %v418_v10, %v308_v9  ;;  %v186_v13 = vadd.f32 %v426_v11, %v308_v9  ;;  %v145_v14 = vpop.f32.mrb[1].mxu0  ;;  %v177_v15 = vpop.f32.mrb[1].mxu1 }
  0xdb   :  { %v146_v16 = vadd.f32 %v308_v9, %v145_v14  ;;  %v178_v17 = vadd.f32 %v308_v9, %v177_v15  ;;  %v419_v18 = vpop.f32.mrb[2].mxu0  ;;  %v427_v19 = vpop.f32.mrb[2].mxu1 }
  0xdc   :  { %v157_v20 = vadd.f32 %v419_v18, %v308_v9  ;;  %v189_v21 = vadd.f32 %v427_v19, %v308_v9  ;;  %v148_v22 = vpop.f32.mrb[3].mxu0  ;;  %v180_v23 = vpop.f32.mrb[3].mxu1  ;;  %v210_v26 = vmax.f32 %v154_v12, 0.0  ;;  %v218_v27 = vmax.f32 %v186_v13, 0.0 }
  0xdd   :  { %v149_v24 = vadd.f32 %v308_v9, %v148_v22  ;;  %v181_v25 = vadd.f32 %v308_v9, %v180_v23  ;;  %v208_v30 = vmax.f32 %v146_v16, 0.0  ;;  %v216_v31 = vmax.f32 %v178_v17, 0.0 }
  0xde   :  { %v211_v28 = vmax.f32 %v157_v20, 0.0  ;;  %v219_v29 = vmax.f32 %v189_v21, 0.0 }
  0xdf   :  { %v209_v32 = vmax.f32 %v149_v24, 0.0  ;;  %v217_v33 = vmax.f32 %v181_v25, 0.0 }
  0xe0   :  { %v366_v34 = vpack.c.bf16 %v211_v28, %v210_v26  ;;  %v386_v35 = vpack.c.bf16 %v219_v29, %v218_v27 }
  0xe1   :  { %v361_v36 = vpack.c.bf16 %v209_v32, %v208_v30  ;;  %v381_v37 = vpack.c.bf16 %v217_v33, %v216_v31  ;;  %v422_v38 = vpop.f32.mrb[4].mxu0  ;;  %v430_v39 = vpop.f32.mrb[4].mxu1 }
  0xe2   :  { %398 = vst [vmem:[%s528_s3 + $0x8] sm:$0xff] %v366_v34   ;;  %402 = vst [vmem:[%s528_s3 + $0x28] sm:$0xff] %v386_v35   ;;  %v170_v40 = vadd.f32 %v422_v38, %v308_v9  ;;  %v202_v41 = vadd.f32 %v430_v39, %v308_v9  ;;  %v161_v42 = vpop.f32.mrb[5].mxu0  ;;  %v193_v43 = vpop.f32.mrb[5].mxu1 }
  0xe3   :  { %362 = vst [vmem:[%s528_s3] sm:$0xff] %v361_v36   ;;  %401 = vst [vmem:[%s528_s3 + $0x20] sm:$0xff] %v381_v37   ;;  %v162_v44 = vadd.f32 %v308_v9, %v161_v42  ;;  %v194_v45 = vadd.f32 %v308_v9, %v193_v43  ;;  %v423_v46 = vpop.f32.mrb[6].mxu0  ;;  %v431_v47 = vpop.f32.mrb[6].mxu1 }
  0xe4   :  { %v173_v48 = vadd.f32 %v423_v46, %v308_v9  ;;  %v205_v49 = vadd.f32 %v431_v47, %v308_v9  ;;  %v164_v50 = vpop.f32.mrb[7].mxu0  ;;  %v196_v51 = vpop.f32.mrb[7].mxu1  ;;  %v214_v54 = vmax.f32 %v170_v40, 0.0  ;;  %v222_v55 = vmax.f32 %v202_v41, 0.0 }
  0xe5   :  { %v165_v52 = vadd.f32 %v308_v9, %v164_v50  ;;  %v197_v53 = vadd.f32 %v308_v9, %v196_v51  ;;  %v212_v58 = vmax.f32 %v162_v44, 0.0  ;;  %v220_v59 = vmax.f32 %v194_v45, 0.0 }
  0xe6   :  { %v215_v56 = vmax.f32 %v173_v48, 0.0  ;;  %v223_v57 = vmax.f32 %v205_v49, 0.0 }
  0xe7   :  { %v213_v60 = vmax.f32 %v165_v52, 0.0  ;;  %v221_v61 = vmax.f32 %v197_v53, 0.0 }
  0xe8   :  { %v376_v62 = vpack.c.bf16 %v215_v56, %v214_v54  ;;  %v396_v63 = vpack.c.bf16 %v223_v57, %v222_v55 }
  0xe9   :  { %v371_v0 = vpack.c.bf16 %v213_v60, %v212_v58  ;;  %v391_v1 = vpack.c.bf16 %v221_v61, %v220_v59 }
  0xea   :  { %400 = vst [vmem:[%s528_s3 + $0x18] sm:$0xff] %v376_v62   ;;  %404 = vst [vmem:[%s528_s3 + $0x38] sm:$0xff] %v396_v63  }
  0xeb   :  { %399 = vst [vmem:[%s528_s3 + $0x10] sm:$0xff] %v371_v0   ;;  %403 = vst [vmem:[%s528_s3 + $0x30] sm:$0xff] %v391_v1  }

// kernel: vqvae_forward.5
= control target key start
LH: loop header
LB: loop body
LE: loop exit
PB: predicated region body
PF: predicated region fallthrough
CT: control target
= control target key end

     0   :  { %vm808_vm13 = vcmask 7168   ;;  %s1470_s1 = inlined_call_operand.vmem [shape: bf16[512,128], index: 1, kind: input, shape index: {}]   ;;  %s1471_s0 = inlined_call_operand.vmem [shape: bf16[32,512], index: 0, kind: input, shape index: {}]   ;;  %s1472_s3 = inlined_call_operand.vmem [shape: f32[128,128], index: 3, kind: input, shape index: {}]   ;;  %s1473_s2 = inlined_call_operand.vmem [shape: f32[1,128], index: 2, kind: input, shape index: {}]   ;;  %s1474_s4 = inlined_call_operand.vmem [shape: f32[1,128], index: 4, kind: input, shape index: {}]   ;;  %s1475_s6 = inlined_call_operand.vmem [shape: s32[32,128], index: 6, kind: output, shape index: {1}]   ;;  %s1476_s5 = inlined_call_operand.vmem [shape: bf16[32,128], index: 5, kind: output, shape index: {0}]   ;;  %s1477_s7 = inlined_call_operand.vmem [shape: f32[8,128], index: 7, kind: output, shape index: {2}]  }
   0x1   :  { %v1147_v0 = vld [vmem:[%s1470_s1 + $0x40] sm:$0xff]   ;;  %v1151_v4 = vld [vmem:[%s1470_s1 + $0x48] sm:$0xff]   ;;  %v1155_v8 = vld [vmem:[%s1470_s1 + $0x50] sm:$0xff]  }
   0x2   :  { %v1148_v1 = vld [vmem:[%s1470_s1 + $0xc0] sm:$0xff]   ;;  %908 = vmatprep.subr.bf16.mxu0 %v1147_v0  ;;  %v1152_v5 = vld [vmem:[%s1470_s1 + $0xc8] sm:$0xff]   ;;  %v1156_v9 = vld [vmem:[%s1470_s1 + $0xd0] sm:$0xff]  }
   0x3   :  { %v1149_v2 = vld [vmem:[%s1470_s1] sm:$0xff]   ;;  %936 = vmatprep.subr.bf16.mxu1 %v1148_v1  ;;  %v1153_v6 = vld [vmem:[%s1470_s1 + $0x8] sm:$0xff]   ;;  %v1157_v10 = vld [vmem:[%s1470_s1 + $0x10] sm:$0xff]  }
   0x4   :  { %v1150_v3 = vld [vmem:[%s1470_s1 + $0x80] sm:$0xff]   ;;  %909 = vmatpush3.bf16.msra.mxu0 %v1149_v2  ;;  %v1154_v7 = vld [vmem:[%s1470_s1 + $0x88] sm:$0xff]   ;;  %v1158_v11 = vld [vmem:[%s1470_s1 + $0x90] sm:$0xff]  }
   0x5   :  { %937 = vmatpush3.bf16.msra.mxu1 %v1150_v3  ;;  %910 = vmatprep.subr.bf16.mxu0 %v1151_v4  ;;  %v1159_v12 = vld [vmem:[%s1470_s1 + $0x58] sm:$0xff]   ;;  %v1163_v16 = vld [vmem:[%s1470_s1 + $0x60] sm:$0xff]   ;;  %v1167_v20 = vld [vmem:[%s1470_s1 + $0x68] sm:$0xff]  }
   0x6   :  { %938 = vmatprep.subr.bf16.mxu1 %v1152_v5  ;;  %v1160_v13 = vld [vmem:[%s1470_s1 + $0xd8] sm:$0xff]   ;;  %v1164_v17 = vld [vmem:[%s1470_s1 + $0xe0] sm:$0xff]   ;;  %v1168_v21 = vld [vmem:[%s1470_s1 + $0xe8] sm:$0xff]  }
   0x7   :  { %v1161_v14 = vld [vmem:[%s1470_s1 + $0x18] sm:$0xff]   ;;  %v1165_v18 = vld [vmem:[%s1470_s1 + $0x20] sm:$0xff]   ;;  %v1169_v22 = vld [vmem:[%s1470_s1 + $0x28] sm:$0xff]  }
   0x8   :  { %911 = vmatpush3.bf16.msra.mxu0 %v1153_v6  ;;  %v1162_v15 = vld [vmem:[%s1470_s1 + $0x98] sm:$0xff]   ;;  %v1166_v19 = vld [vmem:[%s1470_s1 + $0xa0] sm:$0xff]   ;;  %v1170_v23 = vld [vmem:[%s1470_s1 + $0xa8] sm:$0xff]  }
   0x9   :  { %939 = vmatpush3.bf16.msra.mxu1 %v1154_v7  ;;  %912 = vmatprep.subr.bf16.mxu0 %v1155_v8  ;;  %v1171_v24 = vld [vmem:[%s1470_s1 + $0x70] sm:$0xff]   ;;  %v1175_v28 = vld [vmem:[%s1470_s1 + $0x78] sm:$0xff]   ;;  %v433_v38 = vld [vmem:[%s1472_s3] sm:$0xff] }
   0xa   :  { %940 = vmatprep.subr.bf16.mxu1 %v1156_v9  ;;  %v1172_v25 = vld [vmem:[%s1470_s1 + $0xf0] sm:$0xff]   ;;  %v1176_v29 = vld [vmem:[%s1470_s1 + $0xf8] sm:$0xff]   ;;  %v434_v39 = vld [vmem:[%s1472_s3 + $0x8] sm:$0xff] }
   0xb   :  { %v1173_v26 = vld [vmem:[%s1470_s1 + $0x30] sm:$0xff]   ;;  %v1177_v30 = vld [vmem:[%s1470_s1 + $0x38] sm:$0xff]   ;;  %v1080_v40 = vpack.c.bf16 %v434_v39, %v433_v38  ;;  %v437_v46 = vld [vmem:[%s1472_s3 + $0x20] sm:$0xff]  ;;  %v565_v38 = vlaneseq }
   0xc   :  { %913 = vmatpush3.bf16.msra.mxu0 %v1157_v10  ;;  %v1174_v27 = vld [vmem:[%s1470_s1 + $0xb0] sm:$0xff]   ;;  %v1178_v31 = vld [vmem:[%s1470_s1 + $0xb8] sm:$0xff]   ;;  %v438_v47 = vld [vmem:[%s1472_s3 + $0x28] sm:$0xff] }
   0xd   :  { %941 = vmatpush3.bf16.msra.mxu1 %v1158_v11  ;;  %914 = vmatprep.subr.bf16.mxu0 %v1159_v12  ;;  %v1179_v32 = vld [vmem:[%s1471_s0] ss:$16 sps:$4 sm:$0xff]   ;;  %v1181_v33 = vld [vmem:[%s1471_s0 + $0x4] ss:$16 sps:$4 sm:$0xff]   ;;  %v1182_v34 = vld [vmem:[%s1471_s0 + $0x8] ss:$16 sps:$4 sm:$0xff]   ;;  %v1088_v48 = vpack.c.bf16 %v438_v47, %v437_v46 }
   0xe   :  { %942 = vmatprep.subr.bf16.mxu1 %v1160_v13  ;;  %v1184_v35 = vld [vmem:[%s1471_s0 + $0xc] ss:$16 sps:$4 sm:$0xff]   ;;  %367 = vmatprep.mubr.bf16.mxu0 %v1181_v33  ;;  %v1185_v36 = vld [vmem:[%s1471_s0 + $0x24] ss:$16 sps:$4 sm:$0xff]   ;;  %v1189_v44 = vld [vmem:[%s1471_s0 + $0x20] ss:$16 sps:$4 sm:$0xff]  }
   0xf   :  { %416 = vmatprep.mubr.bf16.mxu1 %v1184_v35  ;;  %v1187_v37 = vld [vmem:[%s1471_s0 + $0x2c] ss:$16 sps:$4 sm:$0xff]   ;;  %v435_v41 = vld [vmem:[%s1472_s3 + $0x10] sm:$0xff]  ;;  %v1190_v45 = vld [vmem:[%s1471_s0 + $0x28] ss:$16 sps:$4 sm:$0xff]  }
  0x10   :  { %915 = vmatpush3.bf16.msra.mxu0 %v1161_v14  ;;  %v436_v42 = vld [vmem:[%s1472_s3 + $0x18] sm:$0xff]  ;;  %v439_v49 = vld [vmem:[%s1472_s3 + $0x30] sm:$0xff]  ;;  %v441_v52 = vld [vmem:[%s1472_s3 + $0x40] sm:$0xff] }
  0x11   :  { %943 = vmatpush3.bf16.msra.mxu1 %v1162_v15  ;;  %916 = vmatprep.subr.bf16.mxu0 %v1163_v16  ;;  %v1084_v43 = vpack.c.bf16 %v436_v42, %v435_v41  ;;  %v440_v50 = vld [vmem:[%s1472_s3 + $0x38] sm:$0xff]  ;;  %v442_v53 = vld [vmem:[%s1472_s3 + $0x48] sm:$0xff]  ;;  %v443_v55 = vld [vmem:[%s1472_s3 + $0x50] sm:$0xff] }
  0x12   :  { %944 = vmatprep.subr.bf16.mxu1 %v1164_v17  ;;  %v1092_v51 = vpack.c.bf16 %v440_v50, %v439_v49  ;;  %v1096_v54 = vpack.c.bf16 %v442_v53, %v441_v52  ;;  %v444_v56 = vld [vmem:[%s1472_s3 + $0x58] sm:$0xff]  ;;  %v445_v58 = vld [vmem:[%s1472_s3 + $0x60] sm:$0xff]  ;;  %v446_v59 = vld [vmem:[%s1472_s3 + $0x68] sm:$0xff] }
  0x13   :  { %v1100_v57 = vpack.c.bf16 %v444_v56, %v443_v55  ;;  %v1104_v60 = vpack.c.bf16 %v446_v59, %v445_v58  ;;  %v447_v61 = vld [vmem:[%s1472_s3 + $0x70] sm:$0xff]  ;;  %v448_v62 = vld [vmem:[%s1472_s3 + $0x78] sm:$0xff]  ;;  %v839_v2 = vld [vmem:[%s1473_s2] ss:$0 sm:$0xff] }
  0x14   :  { %917 = vmatpush3.bf16.msra.mxu0 %v1165_v18  ;;  %v1108_v63 = vpack.c.bf16 %v448_v62, %v447_v61  ;;  %v880_v41 = vld [vmem:[%s1474_s4] ss:$0 sm:$0xff] }
  0x15   :  { %945 = vmatpush3.bf16.msra.mxu1 %v1166_v19  ;;  %918 = vmatprep.subr.bf16.mxu0 %v1167_v20 }
  0x16   :  { %946 = vmatprep.subr.bf16.mxu1 %v1168_v21 }
  0x18   :  { %919 = vmatpush3.bf16.msra.mxu0 %v1169_v22 }
  0x19   :  { %947 = vmatpush3.bf16.msra.mxu1 %v1170_v23  ;;  %920 = vmatprep.subr.bf16.mxu0 %v1171_v24 }
  0x1a   :  { %948 = vmatprep.subr.bf16.mxu1 %v1172_v25 }
  0x1c   :  { %921 = vmatpush3.bf16.msra.mxu0 %v1173_v26 }
  0x1d   :  { %949 = vmatpush3.bf16.msra.mxu1 %v1174_v27  ;;  %922 = vmatprep.subr.bf16.mxu0 %v1175_v28 }
  0x1e   :  { %950 = vmatprep.subr.bf16.mxu1 %v1176_v29 }
  0x20   :  { %923 = vmatpush3.bf16.msra.mxu0 %v1177_v30 }
  0x21   :  { %951 = vmatpush3.bf16.msra.mxu1 %v1178_v31  ;;  %1081 = vmatprep.subr.bf16.mxu0 %v1080_v40 }
  0x22   :  { %1113 = vmatprep.subr.bf16.mxu1 %v1080_v40 }
  0x23   :  { %368 = vmatmul.mubr.bf16.vlgmr.msra.gmra.mrb[0].mxu0 %v1179_v32 }
  0x24   :  { %417 = vmatmul.mubr.bf16.vlgmr.msra.gmra.mrb[0].mxu1 %v1182_v34  ;;  %375 = vmatprep.mubr.bf16.mxu0 %v1185_v36 }
  0x25   :  { %424 = vmatprep.mubr.bf16.mxu1 %v1187_v37  ;;  %1115 = vmatpush3.bf16.msra.mxu1 %v1080_v40 }
  0x26   :  { %1117 = vmatprep.subr.bf16.mxu1 %v1084_v43 }
  0x29   :  { %1083 = vmatpush3.bf16.xpose.msra.mxu0 %v1080_v40  ;;  %1119 = vmatpush3.bf16.msra.mxu1 %v1084_v43  ;;  %v1423_v40 = vand.u32 127, %v565_v38 }
  0x2a   :  { %1085 = vmatprep.subr.bf16.mxu0 %v1084_v43  ;;  %1121 = vmatprep.subr.bf16.mxu1 %v1088_v48 }
  0x2b   :  { %376 = vmatmul.mubr.bf16.gmra.mrb[4].mxu0 %v1189_v44  ;;  %vm567_vm0 = vcmp.lt.s32.totalorder %v1423_v40, 32 }
  0x2c   :  { %425 = vmatmul.mubr.bf16.gmra.mrb[4].mxu1 %v1190_v45 }
  0x2d   :  { %1123 = vmatpush3.bf16.msra.mxu1 %v1088_v48 }
  0x2e   :  { %1125 = vmatprep.subr.bf16.mxu1 %v1092_v51 }
  0x31   :  { %1087 = vmatpush3.bf16.xpose.msra.mxu0 %v1084_v43  ;;  %1127 = vmatpush3.bf16.msra.mxu1 %v1092_v51 }
  0x32   :  { %1089 = vmatprep.subr.bf16.mxu0 %v1088_v48  ;;  %1129 = vmatprep.subr.bf16.mxu1 %v1096_v54 }
  0x35   :  { %1131 = vmatpush3.bf16.msra.mxu1 %v1096_v54 }
  0x36   :  { %1133 = vmatprep.subr.bf16.mxu1 %v1100_v57 }
  0x39   :  { %1091 = vmatpush3.bf16.xpose.msra.mxu0 %v1088_v48  ;;  %1135 = vmatpush3.bf16.msra.mxu1 %v1100_v57 }
  0x3a   :  { %1093 = vmatprep.subr.bf16.mxu0 %v1092_v51  ;;  %1137 = vmatprep.subr.bf16.mxu1 %v1104_v60 }
  0x3d   :  { %1139 = vmatpush3.bf16.msra.mxu1 %v1104_v60 }
  0x3e   :  { %1141 = vmatprep.subr.bf16.mxu1 %v1108_v63 }
  0x41   :  { %1095 = vmatpush3.bf16.xpose.msra.mxu0 %v1092_v51  ;;  %1143 = vmatpush3.bf16.msra.mxu1 %v1108_v63 }
  0x42   :  { %1097 = vmatprep.subr.bf16.mxu0 %v1096_v54 }
  0x49   :  { %1099 = vmatpush3.bf16.xpose.msra.mxu0 %v1096_v54 }
  0x4a   :  { %1101 = vmatprep.subr.bf16.mxu0 %v1100_v57 }
  0x51   :  { %1103 = vmatpush3.bf16.xpose.msra.mxu0 %v1100_v57 }
  0x52   :  { %1105 = vmatprep.subr.bf16.mxu0 %v1104_v60 }
  0x59   :  { %1107 = vmatpush3.bf16.xpose.msra.mxu0 %v1104_v60 }
  0x5a   :  { %1109 = vmatprep.subr.bf16.mxu0 %v1108_v63 }
  0x61   :  { %1111 = vmatpush3.bf16.xpose.msra.mxu0 %v1108_v63 }
  0xf6   :  { %v924_v0 = vpop.f32.mrb[0].mxu0 }
  0xf7   :  { %v952_v1 = vpop.f32.mrb[0].mxu1  ;;  %v925_v3 = vpop.f32.mrb[1].mxu0 }
  0xf8   :  { %v926_v4 = vadd.f32 %v925_v3, %v924_v0  ;;  %v953_v5 = vpop.f32.mrb[1].mxu1  ;;  %v927_v6 = vpop.f32.mrb[2].mxu0 }
  0xf9   :  { %v954_v7 = vadd.f32 %v953_v5, %v952_v1  ;;  %v955_v8 = vpop.f32.mrb[2].mxu1  ;;  %v928_v9 = vpop.f32.mrb[3].mxu0 }
  0xfa   :  { %v370_v10 = vadd.f32 %v926_v4, %v839_v2  ;;  %v929_v11 = vadd.f32 %v928_v9, %v927_v6  ;;  %v956_v12 = vpop.f32.mrb[3].mxu1 }
  0xfb   :  { %v957_v13 = vadd.f32 %v956_v12, %v955_v8 }
  0xfc   :  { %v1403_v14 = vadd.f32 %v954_v7, %v370_v10  ;;  %v373_v15 = vadd.f32 %v929_v11, %v839_v2 }
  0xfe   :  { %v1405_v16 = vadd.f32 %v957_v13, %v373_v15  ;;  %v930_v17 = vpop.f32.mrb[4].mxu0  ;;  %1036 = vmatprep.mubr.f32.mxu0 %v1403_v14  ;;  %v449_v18 = vmul.f32 %v1403_v14, %v1403_v14 }
  0xff   :  { %v958_v19 = vpop.f32.mrb[4].mxu1  ;;  %v931_v20 = vpop.f32.mrb[5].mxu0 }
 0x100   :  { %v932_v21 = vadd.f32 %v931_v20, %v930_v17  ;;  %v959_v22 = vpop.f32.mrb[5].mxu1  ;;  %v933_v23 = vpop.f32.mrb[6].mxu0  ;;  %1037 = vmatmul.mubr.f32.vlgmr.msra.gmra.mrb[8].mxu0 %v1405_v16  ;;  %453 = vadd.xlane.f32.xlu0 %v449_v18  ;;  %v450_v30 = vmul.f32 %v1405_v16, %v1405_v16 }
 0x101   :  { %v960_v24 = vadd.f32 %v959_v22, %v958_v19  ;;  %v961_v25 = vpop.f32.mrb[6].mxu1  ;;  %v934_v26 = vpop.f32.mrb[7].mxu0 }
 0x102   :  { %v378_v27 = vadd.f32 %v932_v21, %v839_v2  ;;  %v935_v28 = vadd.f32 %v934_v26, %v933_v23  ;;  %v962_v29 = vpop.f32.mrb[7].mxu1 }
 0x103   :  { %v963_v31 = vadd.f32 %v962_v29, %v961_v25 }
 0x104   :  { %v1413_v32 = vadd.f32 %v960_v24, %v378_v27  ;;  %v381_v33 = vadd.f32 %v935_v28, %v839_v2  ;;  %455 = vadd.xlane.f32.xlu0 %v450_v30 }
 0x106   :  { %v1415_v34 = vadd.f32 %v963_v31, %v381_v33  ;;  %1039 = vmatprep.mubr.f32.mxu0 %v1413_v32  ;;  %v451_v35 = vmul.f32 %v1413_v32, %v1413_v32 }
 0x108   :  { %457 = vadd.xlane.f32.xlu1 %v451_v35  ;;  %1040 = vmatmul.mubr.f32.gmra.mrb[10].mxu0 %v1415_v34  ;;  %v452_v36 = vmul.f32 %v1415_v34, %v1415_v34 }
 0x10c   :  { %459 = vadd.xlane.f32.xlu1 %v452_v36 }
 0x18d   :  { %v454_v37 = vpop.xlane.xlu0 %453 }
 0x18e   :  { %v553_v47 = vadd.f32 %v880_v41, %v454_v37 }
 0x191   :  { %v456_v39 = vpop.xlane.xlu0 %455 }
 0x192   :  { %v554_v44 = vadd.f32 %v880_v41, %v456_v39 }
 0x195   :  { %v458_v42 = vpop.xlane.xlu1 %457 }
 0x196   :  { %v555_v58 = vadd.f32 %v880_v41, %v458_v42 }
 0x199   :  { %v460_v52 = vpop.xlane.xlu1 %459 }
 0x19a   :  { %v556_v55 = vadd.f32 %v880_v41, %v460_v52 }
 0x1d3   :  { %v1038_v43 = vpop.f32.mrb[8].mxu0 }
 0x1d4   :  { %v558_v45 = vmul.f32 2.0, %v1038_v43  ;;  %v527_v46 = vpop.f32.mrb[9].mxu0 }
 0x1d5   :  { %v557_v48 = vmul.f32 2.0, %v527_v46 }
 0x1d6   :  { %v562_v49 = vsub.f32 %v554_v44, %v558_v45 }
 0x1d7   :  { %v561_v50 = vsub.f32 %v553_v47, %v557_v48 }
 0x1d8   :  { %v569_v51 = vsel %vm567_vm0, %v562_v49, 1e+30  ;;  %v1191_v49 = vmov 1.0  }
 0x1d9   :  { %574 = vmin.xlane.f32.xlu1 %v569_v51  ;;  %v568_v53 = vsel %vm567_vm0, %v561_v50, 1e+30 }
 0x1da   :  { %572 = vmin.xlane.f32.xlu0 %v568_v53 }
 0x1db   :  { %v1041_v54 = vpop.f32.mrb[10].mxu0 }
 0x1dc   :  { %v560_v56 = vmul.f32 2.0, %v1041_v54  ;;  %v537_v57 = vpop.f32.mrb[11].mxu0 }
 0x1dd   :  { %v559_v59 = vmul.f32 2.0, %v537_v57 }
 0x1de   :  { %v564_v60 = vsub.f32 %v556_v55, %v560_v56 }
 0x1df   :  { %v563_v61 = vsub.f32 %v555_v58, %v559_v59 }
 0x1e0   :  { %v571_v62 = vsel %vm567_vm0, %v564_v60, 1e+30 }
 0x1e1   :  { %578 = vmin.xlane.f32.xlu1 %v571_v62  ;;  %v570_v63 = vsel %vm567_vm0, %v563_v61, 1e+30 }
 0x1e2   :  { %576 = vmin.xlane.f32.xlu0 %v570_v63 }
 0x266   :  { %v575_v0 = vpop.xlane.xlu1 %574 }
 0x267   :  { %vm581_vm1 = vcmp.le.f32.partialorder %v569_v51, %v575_v0  ;;  %v573_v1 = vpop.xlane.xlu0 %572 }
 0x268   :  { %v585_v2 = vsel %vm581_vm1, %v1423_v40, 128  ;;  %vm580_vm2 = vcmp.le.f32.partialorder %v568_v53, %v573_v1 }
 0x269   :  { %v584_v3 = vsel %vm580_vm2, %v1423_v40, 128  ;;  %v603_v4 = vshra.s32 %v585_v2, 16  ;;  %v602_v18 = vand.u32 65535, %v585_v2 }
 0x26a   :  { %v589_v5 = vshra.s32 %v584_v3, 16  ;;  %v588_v19 = vand.u32 65535, %v584_v3 }
 0x26b   :  { %v605_v6 = vcvt.s32.f32 %v603_v4  ;;  %v604_v21 = vcvt.s32.f32 %v602_v18 }
 0x26c   :  { %v591_v7 = vcvt.s32.f32 %v589_v5  ;;  %v590_v23 = vcvt.s32.f32 %v588_v19 }
 0x26d   :  { %606 = vmin.xlane.f32.xlu1 %v605_v6 }
 0x26e   :  { %v579_v8 = vpop.xlane.xlu1 %578  ;;  %592 = vmin.xlane.f32.xlu0 %v591_v7 }
 0x26f   :  { %vm583_vm3 = vcmp.le.f32.partialorder %v571_v62, %v579_v8  ;;  %v577_v9 = vpop.xlane.xlu0 %576 }
 0x270   :  { %v587_v10 = vsel %vm583_vm3, %v1423_v40, 128  ;;  %vm582_vm4 = vcmp.le.f32.partialorder %v570_v63, %v577_v9 }
 0x271   :  { %v586_v11 = vsel %vm582_vm4, %v1423_v40, 128  ;;  %v631_v12 = vshra.s32 %v587_v10, 16  ;;  %v630_v26 = vand.u32 65535, %v587_v10 }
 0x272   :  { %v617_v13 = vshra.s32 %v586_v11, 16  ;;  %v616_v27 = vand.u32 65535, %v586_v11 }
 0x273   :  { %v633_v15 = vcvt.s32.f32 %v631_v12  ;;  %v632_v29 = vcvt.s32.f32 %v630_v26 }
 0x274   :  { %v619_v17 = vcvt.s32.f32 %v617_v13  ;;  %v618_v31 = vcvt.s32.f32 %v616_v27 }
 0x275   :  { %634 = vmin.xlane.f32.xlu1 %v633_v15 }
 0x276   :  { %620 = vmin.xlane.f32.xlu0 %v619_v17 }
 0x2fa   :  { %v607_v20 = vpop.xlane.xlu1 %606 }
 0x2fb   :  { %v593_v22 = vpop.xlane.xlu0 %592  ;;  %vm608_vm5 = vcmp.eq.f32.partialorder %v605_v6, %v607_v20  ;;  %v613_v36 = vcvt.f32.s32 %v607_v20 }
 0x2fc   :  { %v609_v24 = vsel %vm608_vm5, %v604_v21, inf  ;;  %vm594_vm6 = vcmp.eq.f32.partialorder %v591_v7, %v593_v22  ;;  %v599_v37 = vcvt.f32.s32 %v593_v22 }
 0x2fd   :  { %610 = vmin.xlane.f32.xlu1 %v609_v24  ;;  %v595_v25 = vsel %vm594_vm6, %v590_v23, inf  ;;  %v614_v39 = vshll.u32 %v613_v36, 16 }
 0x2fe   :  { %596 = vmin.xlane.f32.xlu0 %v595_v25  ;;  %v600_v43 = vshll.u32 %v599_v37, 16 }
 0x302   :  { %v635_v28 = vpop.xlane.xlu1 %634 }
 0x303   :  { %v621_v30 = vpop.xlane.xlu0 %620  ;;  %vm636_vm7 = vcmp.eq.f32.partialorder %v633_v15, %v635_v28  ;;  %v641_v47 = vcvt.f32.s32 %v635_v28 }
 0x304   :  { %v637_v33 = vsel %vm636_vm7, %v632_v29, inf  ;;  %vm622_vm8 = vcmp.eq.f32.partialorder %v619_v17, %v621_v30  ;;  %v627_v48 = vcvt.f32.s32 %v621_v30 }
 0x305   :  { %638 = vmin.xlane.f32.xlu1 %v637_v33  ;;  %v623_v35 = vsel %vm622_vm8, %v618_v31, inf  ;;  %v642_v51 = vshll.u32 %v641_v47, 16 }
 0x306   :  { %624 = vmin.xlane.f32.xlu0 %v623_v35  ;;  %v628_v54 = vshll.u32 %v627_v48, 16 }
 0x38a   :  { %v611_v38 = vpop.xlane.xlu1 %610 }
 0x38b   :  { %v612_v41 = vcvt.f32.s32 %v611_v38  ;;  %v597_v42 = vpop.xlane.xlu0 %596 }
 0x38c   :  { %v598_v44 = vcvt.f32.s32 %v597_v42 }
 0x38d   :  { %v615_v45 = vadd.s32 %v614_v39, %v612_v41 }
 0x38e   :  { %v601_v46 = vadd.s32 %v600_v43, %v598_v44 }
 0x38f   :  { %762 = vst [vmem:[%s1475_s6 + $0x8] sm:$0xff] %v615_v45  ;;  %vm645_vm10 = vcmp.eq.s32.totalorder %v1423_v40, %v615_v45 }
 0x390   :  { %761 = vst [vmem:[%s1475_s6] sm:$0xff] %v601_v46  ;;  %vm644_vm9 = vcmp.eq.s32.totalorder %v1423_v40, %v601_v46 }
 0x391   :  { %1074 = vmatprep.mubr.msk.f32.mxu1 %vm644_vm9, %v1191_v49 }
 0x392   :  { %v639_v50 = vpop.xlane.xlu1 %638  ;;  %1075 = vmatmul.mubr.msk.f32.vlgmr.msra.gmra.mrb[8].mxu1 %vm645_vm10, %v1191_v49 }
 0x393   :  { %v640_v52 = vcvt.f32.s32 %v639_v50  ;;  %v625_v53 = vpop.xlane.xlu0 %624 }
 0x394   :  { %v626_v55 = vcvt.f32.s32 %v625_v53 }
 0x395   :  { %v643_v56 = vadd.s32 %v642_v51, %v640_v52 }
 0x396   :  { %v629_v57 = vadd.s32 %v628_v54, %v626_v55 }
 0x397   :  { %764 = vst [vmem:[%s1475_s6 + $0x18] sm:$0xff] %v643_v56  ;;  %vm647_vm12 = vcmp.eq.s32.totalorder %v1423_v40, %v643_v56 }
 0x398   :  { %763 = vst [vmem:[%s1475_s6 + $0x10] sm:$0xff] %v629_v57  ;;  %vm646_vm11 = vcmp.eq.s32.totalorder %v1423_v40, %v629_v57 }
 0x399   :  { %1077 = vmatprep.mubr.msk.f32.mxu1 %vm646_vm11, %v1191_v49 }
 0x39a   :  { %1078 = vmatmul.mubr.msk.f32.gmra.mrb[10].mxu1 %vm647_vm12, %v1191_v49 }
 0x465   :  { %v1076_v58 = vpop.f32.mrb[8].mxu1 }
 0x466   :  { %v789_v59 = vsub.f32 %v1076_v58, %v1405_v16  ;;  %v722_v60 = vpop.f32.mrb[9].mxu1 }
 0x467   :  { %v900_v61 = vpack.c.bf16 %v1076_v58, %v722_v60  ;;  %v788_v62 = vsub.f32 %v722_v60, %v1403_v14 }
 0x468   :  { %v793_v63 = vmul.f32 %v789_v59, %v789_v59 }
 0x469   :  { %v792_v0 = vmul.f32 %v788_v62, %v788_v62  ;;  %901 = vst [vmem:[%s1476_s5] sm:$0xff] %v900_v61  }
 0x46a   :  { %798 = vadd.xlane.f32.xlu1 %v793_v63 }
 0x46b   :  { %796 = vadd.xlane.f32.xlu0 %v792_v0 }
 0x46d   :  { %v1079_v1 = vpop.f32.mrb[10].mxu1 }
 0x46e   :  { %v791_v2 = vsub.f32 %v1079_v1, %v1415_v34  ;;  %v732_v40 = vpop.f32.mrb[11].mxu1 }
 0x46f   :  { %v905_v3 = vpack.c.bf16 %v1079_v1, %v732_v40  ;;  %v790_v4 = vsub.f32 %v732_v40, %v1413_v32 }
 0x470   :  { %v795_v16 = vmul.f32 %v791_v2, %v791_v2 }
 0x471   :  { %907 = vst [vmem:[%s1476_s5 + $0x8] sm:$0xff] %v905_v3   ;;  %v794_v14 = vmul.f32 %v790_v4, %v790_v4 }
 0x472   :  { %802 = vadd.xlane.f32.xlu1 %v795_v16 }
 0x473   :  { %800 = vadd.xlane.f32.xlu0 %v794_v14 }
 0x4f7   :  { %v799_v5 = vpop.xlane.xlu1 %798 }
 0x4f8   :  { %v797_v6 = vpop.xlane.xlu0 %796  ;;  %v810_v7 = vsel %vm808_vm13, %v799_v5, 0.0 }
 0x4f9   :  { %v809_v8 = vsel %vm808_vm13, %v797_v6, 0.0 }
 0x4fa   :  { %v811_v9 = vadd.f32 %v810_v7, %v809_v8 }
 0x4ff   :  { %v803_v10 = vpop.xlane.xlu1 %802 }
 0x500   :  { %v801_v34 = vpop.xlane.xlu0 %800  ;;  %v814_v13 = vsel %vm808_vm13, %v803_v10, 0.0 }
 0x501   :  { %v812_v11 = vsel %vm808_vm13, %v801_v34, 0.0 }
 0x502   :  { %v813_v12 = vadd.f32 %v812_v11, %v811_v9 }
 0x504   :  { %v815_v32 = vadd.f32 %v814_v13, %v813_v12 }
 0x506   :  { %816 = vadd.xlane.f32.xlu0 %v815_v32 }
 0x593   :  { %v817_v15 = vpop.xlane.xlu0 %816 }
 0x594   :  { %v818_v17 = vrot.slane %v817_v15, 4 }
 0x596   :  { %v819_v18 = vadd.f32 %v818_v17, %v817_v15 }
 0x598   :  { %v820_v19 = vrot.slane %v819_v18, 2 }
 0x59a   :  { %v821_v20 = vadd.f32 %v820_v19, %v819_v18 }
 0x59c   :  { %v822_v21 = vrot.slane %v821_v20, 1 }
 0x59e   :  { %v823_v22 = vadd.f32 %v822_v21, %v821_v20 }
 0x5a0   :  { %1144 = vpush %v823_v22 }
 0x5d1   :  { %s1145_s5 = spop %1144 }
 0x5d2   :  { %v825_v23 = vstv %s1145_s5 }
 0x5d3   :  { %826 = vst [vmem:[%s1477_s7] sm:$0xff] %v825_v23 }

// kernel: tile.13
= control target key start
LH: loop header
LB: loop body
LE: loop exit
PB: predicated region body
PF: predicated region fallthrough
CT: control target
= control target key end

     0   :  { %s22_s0 = inlined_call_operand.vmem [shape: f32[32], index: 0, kind: input, shape index: {}]   ;;  %s23_s1 = inlined_call_operand.vmem [shape: f32[4,32], index: 1, kind: output, shape index: {}]  }
   0x1   :  { %v4_v0 = vld [vmem:[%s22_s0] ss:$0 sm:$0xff] }
   0x2   :  { %5 = vst [vmem:[%s23_s1] sm:$0xf] %v4_v0 }

// kernel: vqvae_forward.6
= control target key start
LH: loop header
LB: loop body
LE: loop exit
PB: predicated region body
PF: predicated region fallthrough
CT: control target
= control target key end

     0   :  { %v269_v0 = vmov 0   ;;  %vm116_vm0 = vcmask 130048   ;;  %s338_s1 = inlined_call_operand.vmem [shape: bf16[144,128], index: 1, kind: input, shape index: {}]   ;;  %s339_s0 = inlined_call_operand.vmem [shape: bf16[32,144], index: 0, kind: input, shape index: {}]   ;;  %s340_s2 = inlined_call_operand.vmem [shape: f32[1,128], index: 2, kind: input, shape index: {}]   ;;  %s341_s3 = inlined_call_operand.vmem [shape: bf16[32,128], index: 3, kind: output, shape index: {}]  }
   0x1   :  { %123 = vmatprep.subr.bf16.mxu0 %v269_v0  ;;  %235 = vmatprep.subr.bf16.mxu1 %v269_v0  ;;  %v254_v1 = vld [vmem:[%s338_s1] sm:$0xff]   ;;  %v255_v2 = vld [vmem:[%s338_s1 + $0x8] sm:$0xff]   ;;  %v256_v3 = vld [vmem:[%s338_s1 + $0x10] sm:$0xff]  }
   0x2   :  { %124 = vmatpush1.bf16.msra.mxu0 %v254_v1  ;;  %244 = vmatpush1.bf16.msra.mxu1 %v254_v1  ;;  %v257_v4 = vld [vmem:[%s338_s1 + $0x18] sm:$0xff]   ;;  %v265_v5 = vld [vmem:[%s339_s0 + $0x4] ss:$8 sps:$4 sm:$0xff]   ;;  %v260_v9 = vld [vmem:[%s338_s1 + $0x30] sm:$0xff]  }
   0x3   :  { %125 = vmatprep.subr.bf16.mxu0 %v269_v0  ;;  %236 = vmatprep.subr.bf16.mxu1 %v269_v0  ;;  %v268_v6 = vld [vmem:[%s339_s0 + $0x14] ss:$8 sps:$4 sm:$0xff]   ;;  %v258_v7 = vld [vmem:[%s338_s1 + $0x20] sm:$0xff]   ;;  %v259_v8 = vld [vmem:[%s338_s1 + $0x28] sm:$0xff]  }
   0x4   :  { %214 = vmatprep.mubr.msk.bf16.mxu0 %vm116_vm0, %v265_v5  ;;  %215 = vmatprep.mubr.msk.bf16.mxu1 %vm116_vm0, %v268_v6  ;;  %v261_v10 = vld [vmem:[%s338_s1 + $0x38] sm:$0xff]   ;;  %v262_v11 = vld [vmem:[%s338_s1 + $0x40] sm:$0xff]  }
   0x5   :  { %v263_v12 = vld [vmem:[%s339_s0] ss:$8 sps:$4 sm:$0xff]   ;;  %v266_v13 = vld [vmem:[%s339_s0 + $0x10] ss:$8 sps:$4 sm:$0xff]  }
   0x6   :  { %126 = vmatpush1.bf16.msra.mxu0 %v255_v2  ;;  %245 = vmatpush1.bf16.msra.mxu1 %v255_v2  ;;  %v200_v14 = vld [vmem:[%s340_s2] ss:$0 sm:$0xff] }
   0x7   :  { %127 = vmatprep.subr.bf16.mxu0 %v269_v0  ;;  %237 = vmatprep.subr.bf16.mxu1 %v269_v0 }
   0xa   :  { %128 = vmatpush1.bf16.msra.mxu0 %v256_v3  ;;  %246 = vmatpush1.bf16.msra.mxu1 %v256_v3 }
   0xb   :  { %129 = vmatprep.subr.bf16.mxu0 %v269_v0  ;;  %238 = vmatprep.subr.bf16.mxu1 %v269_v0 }
   0xe   :  { %130 = vmatpush1.bf16.msra.mxu0 %v257_v4  ;;  %247 = vmatpush1.bf16.msra.mxu1 %v257_v4 }
   0xf   :  { %131 = vmatprep.subr.bf16.mxu0 %v269_v0  ;;  %239 = vmatprep.subr.bf16.mxu1 %v269_v0 }
  0x12   :  { %132 = vmatpush1.bf16.msra.mxu0 %v258_v7  ;;  %248 = vmatpush1.bf16.msra.mxu1 %v258_v7 }
  0x13   :  { %133 = vmatprep.subr.bf16.mxu0 %v269_v0  ;;  %240 = vmatprep.subr.bf16.mxu1 %v269_v0 }
  0x16   :  { %134 = vmatpush1.bf16.msra.mxu0 %v259_v8  ;;  %249 = vmatpush1.bf16.msra.mxu1 %v259_v8 }
  0x17   :  { %135 = vmatprep.subr.bf16.mxu0 %v269_v0  ;;  %241 = vmatprep.subr.bf16.mxu1 %v269_v0 }
  0x1a   :  { %136 = vmatpush1.bf16.msra.mxu0 %v260_v9  ;;  %250 = vmatpush1.bf16.msra.mxu1 %v260_v9 }
  0x1b   :  { %137 = vmatprep.subr.bf16.mxu0 %v269_v0  ;;  %242 = vmatprep.subr.bf16.mxu1 %v269_v0 }
  0x1e   :  { %138 = vmatpush1.bf16.msra.mxu0 %v261_v10  ;;  %251 = vmatpush1.bf16.msra.mxu1 %v261_v10 }
  0x1f   :  { %139 = vmatprep.subr.bf16.mxu0 %v269_v0  ;;  %243 = vmatprep.subr.bf16.mxu1 %v269_v0 }
  0x22   :  { %140 = vmatpush1.bf16.msra.mxu0 %v262_v11  ;;  %252 = vmatpush1.bf16.msra.mxu1 %v262_v11 }
  0x25   :  { %156 = vmatmul.mubr.bf16.vlgmr.msra.gmra.mrb[0].mxu0 %v263_v12  ;;  %164 = vmatmul.mubr.bf16.vlgmr.msra.gmra.mrb[0].mxu1 %v266_v13 }
  0xf8   :  { %v157_v15 = vpop.f32.mrb[0].mxu0  ;;  %v165_v16 = vpop.f32.mrb[0].mxu1 }
  0xf9   :  { %v158_v17 = vadd.f32 %v200_v14, %v157_v15  ;;  %v166_v18 = vadd.f32 %v200_v14, %v165_v16  ;;  %v159_v19 = vpop.f32.mrb[1].mxu0  ;;  %v167_v20 = vpop.f32.mrb[1].mxu1 }
  0xfa   :  { %v160_v21 = vpop.f32.mrb[2].mxu0  ;;  %v168_v22 = vpop.f32.mrb[2].mxu1 }
  0xfb   :  { %v161_v23 = vadd.f32 %v200_v14, %v160_v21  ;;  %v169_v24 = vadd.f32 %v200_v14, %v168_v22  ;;  %v162_v25 = vpop.f32.mrb[3].mxu0  ;;  %v170_v26 = vpop.f32.mrb[3].mxu1  ;;  %v172_v27 = vmax.f32 %v158_v17, 0.0  ;;  %v174_v28 = vmax.f32 %v166_v18, 0.0 }
  0xfd   :  { %v173_v29 = vmax.f32 %v161_v23, 0.0  ;;  %v175_v30 = vmax.f32 %v169_v24, 0.0 }
  0xff   :  { %v227_v31 = vpack.c.bf16 %v173_v29, %v172_v27  ;;  %v232_v32 = vpack.c.bf16 %v175_v30, %v174_v28 }
 0x101   :  { %228 = vst [vmem:[%s341_s3] sm:$0xff] %v227_v31   ;;  %234 = vst [vmem:[%s341_s3 + $0x8] sm:$0xff] %v232_v32  }

// kernel: squeeze.35
= control target key start
LH: loop header
LB: loop body
LE: loop exit
PB: predicated region body
PF: predicated region fallthrough
CT: control target
= control target key end

     0   :  { %s146_s0 = inlined_call_operand.vmem [shape: s32[32], index: 0, kind: input, shape index: {}]   ;;  %s147_s1 = inlined_call_operand.hbm [shape: s32[2,4,4], index: 1, kind: output, shape index: {}]  }
   0x1   :  { %v5_v0 = vld [vmem:[%s146_s0] sm:$0x1] }
   0x2   :  { %6 = vst [vmem:[#allocation3] sm:$0x1] %v5_v0 }
   0x3   :  { %2 = vsyncpa [#allocation1], 0  ;;  %s105_s0 = smov 124   ;;  %s106_s8 = smov 116   ;;  %vm8_vm0 = vcmask 31744  }
   0x4   :  { %s107_s9 = smov 120   ;;  %s108_s10 = smov 112  }
   0x5   :  { %s109_s11 = smov 108   ;;  %s110_s12 = smov 104  }
   0x6   :  { %s111_s13 = smov 100   ;;  %s112_s14 = smov [#allocation0]  }
   0x7   :  { %s67_s15 = sshll.u32 %s112_s14, 4  ;;  %s68_s15 = int_to_ptr.vmem [resolvable:$true] %s67_s15 }
   0x8   :  { %s81_s16 = scalar_lea.vmem %s68_s15, 128  ;;  %p86_p1 = scmp.lt.s32.totalorder %s68_s15, %s68_s15 }
   0x9   :  { %v10_v1 = vld [vmem:[#allocation3] sm:$0x1]   ;;  %p82_p0 = scmp.ne.s32.totalorder %s68_s15, %s81_s16  ;;  %p87_p2 = scmp.lt.s32.totalorder %s81_s16, %s81_s16 }
   0xa   :  { %v22_v2 = vld [vmem:[#allocation3] sm:$0x1]   ;;  %11 = vrot.lane.b32.xlu0 %v10_v1, %s105_s0 }
   0xb   :  { %23 = vrot.lane.b32.xlu1 %v22_v2, %s106_s8  ;;  %v16_v3 = vld [vmem:[#allocation3] sm:$0x1]   ;;  %p88_p3 = por %p87_p2, %p86_p1 }
   0xc   :  { %v28_v4 = vld [vmem:[#allocation3] sm:$0x1]  }
   0xd   :  { %v7_v5 = vld [vmem:[#allocation3] sm:$0x1]   ;;  %p89_p4 = pnand %p88_p3, %p82_p0 }
   0xe   :  { %9 = vst.msk [vmem:[#allocation2] sm:$0x1] %vm8_vm0, %v7_v5   ;;  %17 = vrot.lane.b32.xlu0 %v16_v3, %s107_s9  ;;  %v34_v6 = vld [vmem:[#allocation3] sm:$0x1]  }
   0xf   :  { %29 = vrot.lane.b32.xlu1 %v28_v4, %s108_s10  ;;  %v40_v7 = vld [vmem:[#allocation3] sm:$0x1]  }
  0x10   :  { %v46_v8 = vld [vmem:[#allocation3] sm:$0x1]  }
  0x12   :  { %35 = vrot.lane.b32.xlu0 %v34_v6, %s109_s11 }
  0x13   :  { %41 = vrot.lane.b32.xlu1 %v40_v7, %s110_s12 }
  0x16   :  { %47 = vrot.lane.b32.xlu0 %v46_v8, %s111_s13 }
  0x7c   :  { %v12_v9 = vpop.permute.xlu0 %11  }
  0x7d   :  { %v24_v10 = vpop.permute.xlu1 %23   ;;  %15 = vst.msk [vmem:[#allocation2 + $0x1] sm:$0x1] %vm8_vm0, %v12_v9  }
  0x7e   :  { %27 = vst.msk [vmem:[#allocation2 + $0x3] sm:$0x1] %vm8_vm0, %v24_v10  }
  0x80   :  { %v18_v11 = vpop.permute.xlu0 %17  }
  0x81   :  { %v30_v12 = vpop.permute.xlu1 %29   ;;  %21 = vst.msk [vmem:[#allocation2 + $0x2] sm:$0x1] %vm8_vm0, %v18_v11  }
  0x82   :  { %33 = vst.msk [vmem:[#allocation2 + $0x8] sm:$0x1] %vm8_vm0, %v30_v12  }
  0x84   :  { %v36_v13 = vpop.permute.xlu0 %35  }
  0x85   :  { %v42_v14 = vpop.permute.xlu1 %41   ;;  %39 = vst.msk [vmem:[#allocation2 + $0x9] sm:$0x1] %vm8_vm0, %v36_v13  }
  0x86   :  { %45 = vst.msk [vmem:[#allocation2 + $0xa] sm:$0x1] %vm8_vm0, %v42_v14  }
  0x88   :  { %v48_v15 = vpop.permute.xlu0 %47   ;;  %v55_v16 = vld [vmem:[#allocation2] sm:$0xf] }
  0x89   :  { %51 = vst.msk [vmem:[#allocation2 + $0xb] sm:$0x1] %vm8_vm0, %v48_v15   ;;  %57 = vst [vmem:[#allocation0] sm:$0xf] %v55_v16 }
  0x90   :  { %v59_v17 = vld [vmem:[#allocation2 + $0x8] sm:$0xf] }
  0x91   :  { %62 = vst [vmem:[#allocation0 + $0x4] sm:$0xf] %v59_v17 }
  0x92   :  { %92 = shalt.err (!%p89_p4)
}
  0x93   :  { %s93_s19 = scalar_lea.hbm %s147_s1, 128 }
  0x94   :  { %p94_p5 = scmp.ne.s32.totalorder %s147_s1, %s93_s19  ;;  %p97_p6 = scmp.lt.u32.totalorder %s93_s19, %s147_s1 }
  0x96   :  { %p99_p7 = pnand %p97_p6, %p94_p5 }
  0x98   :  { %102 = shalt.err (!%p99_p7)
}
  0x99   :  { %70 = dma.vmem_to_hbm [thread:$0]  %s68_s15, 128, %s147_s1, [#allocation1]  }
  0x9a   :  { %103 = dma.done.wait [#allocation1], 128  }
  0x9b   :  { %104 = vsyncadd [#allocation1], 4294967168 }
  0x9c   :  { %72 = vsyncpa [#allocation1], 1 }

// kernel: vqvae_forward.7
= control target key start
LH: loop header
LB: loop body
LE: loop exit
PB: predicated region body
PF: predicated region fallthrough
CT: control target
= control target key end

     0   :  { %vm318_vm0 = vcmask 261120   ;;  %s1185_s1 = inlined_call_operand.vmem [shape: bf16[288,128], index: 1, kind: input, shape index: {}]   ;;  %s1186_s0 = inlined_call_operand.vmem [shape: bf16[128,288], index: 0, kind: input, shape index: {}]   ;;  %s1187_s2 = inlined_call_operand.vmem [shape: f32[1,128], index: 2, kind: input, shape index: {}]   ;;  %s1188_s3 = inlined_call_operand.vmem [shape: f32[128,128], index: 3, kind: output, shape index: {}]  }
   0x1   :  { %v830_v0 = vld [vmem:[%s1185_s1 + $0x40] sm:$0xff]   ;;  %v832_v2 = vld [vmem:[%s1185_s1 + $0x48] sm:$0xff]   ;;  %v834_v4 = vld [vmem:[%s1185_s1 + $0x50] sm:$0xff]  }
   0x2   :  { %v831_v1 = vld [vmem:[%s1185_s1] sm:$0xff]   ;;  %720 = vmatprep.subr.bf16.mxu0 %v830_v0  ;;  %814 = vmatprep.subr.bf16.mxu1 %v830_v0  ;;  %v833_v3 = vld [vmem:[%s1185_s1 + $0x8] sm:$0xff]   ;;  %v835_v5 = vld [vmem:[%s1185_s1 + $0x10] sm:$0xff]  }
   0x3   :  { %721 = vmatpush3.bf16.msra.mxu0 %v831_v1  ;;  %822 = vmatpush3.bf16.msra.mxu1 %v831_v1  ;;  %v836_v6 = vld [vmem:[%s1185_s1 + $0x58] sm:$0xff]   ;;  %v838_v8 = vld [vmem:[%s1185_s1 + $0x60] sm:$0xff]   ;;  %v840_v10 = vld [vmem:[%s1185_s1 + $0x68] sm:$0xff]  }
   0x4   :  { %722 = vmatprep.subr.bf16.mxu0 %v832_v2  ;;  %815 = vmatprep.subr.bf16.mxu1 %v832_v2  ;;  %v837_v7 = vld [vmem:[%s1185_s1 + $0x18] sm:$0xff]   ;;  %v839_v9 = vld [vmem:[%s1185_s1 + $0x20] sm:$0xff]   ;;  %v841_v13 = vld [vmem:[%s1185_s1 + $0x28] sm:$0xff]  }
   0x5   :  { %v848_v11 = vld [vmem:[%s1186_s0 + $0x4] ss:$12 sps:$4 sm:$0xff]   ;;  %v851_v12 = vld [vmem:[%s1186_s0 + $0x94] ss:$12 sps:$4 sm:$0xff]   ;;  %v844_v16 = vld [vmem:[%s1185_s1 + $0x78] sm:$0xff]  }
   0x6   :  { %v842_v14 = vld [vmem:[%s1185_s1 + $0x70] sm:$0xff]   ;;  %375 = vmatprep.mubr.bf16.mxu0 %v848_v11  ;;  %423 = vmatprep.mubr.bf16.mxu1 %v851_v12  ;;  %v845_v17 = vld [vmem:[%s1185_s1 + $0x38] sm:$0xff]   ;;  %v846_v18 = vld [vmem:[%s1186_s0] ss:$12 sps:$4 sm:$0xff]  }
   0x7   :  { %723 = vmatpush3.bf16.msra.mxu0 %v833_v3  ;;  %823 = vmatpush3.bf16.msra.mxu1 %v833_v3  ;;  %v843_v15 = vld [vmem:[%s1185_s1 + $0x30] sm:$0xff]   ;;  %v852_v19 = vld [vmem:[%s1185_s1 + $0x80] sm:$0xff]   ;;  %v853_v21 = vld [vmem:[%s1186_s0 + $0x1c] ss:$12 sps:$4 sm:$0xff]  }
   0x8   :  { %724 = vmatprep.subr.bf16.mxu0 %v834_v4  ;;  %816 = vmatprep.subr.bf16.mxu1 %v834_v4  ;;  %v849_v20 = vld [vmem:[%s1186_s0 + $0x90] ss:$12 sps:$4 sm:$0xff]   ;;  %v855_v22 = vld [vmem:[%s1186_s0 + $0xac] ss:$12 sps:$4 sm:$0xff]   ;;  %v858_v25 = vld [vmem:[%s1186_s0 + $0xa8] ss:$12 sps:$4 sm:$0xff]  }
   0x9   :  { %v859_v23 = vld [vmem:[%s1185_s1 + $0x88] sm:$0xff]   ;;  %v857_v24 = vld [vmem:[%s1186_s0 + $0x18] ss:$12 sps:$4 sm:$0xff]   ;;  %v860_v26 = vld [vmem:[%s1186_s0 + $0x34] ss:$12 sps:$4 sm:$0xff]  }
   0xa   :  { %v862_v27 = vld [vmem:[%s1186_s0 + $0x8] ss:$12 sps:$4 sm:$0xff]   ;;  %v863_v28 = vld [vmem:[%s1186_s0 + $0x30] ss:$12 sps:$4 sm:$0xff]   ;;  %v864_v29 = vld [vmem:[%s1186_s0 + $0x20] ss:$12 sps:$4 sm:$0xff]  }
   0xb   :  { %725 = vmatpush3.bf16.msra.mxu0 %v835_v5  ;;  %824 = vmatpush3.bf16.msra.mxu1 %v835_v5  ;;  %v865_v30 = vld [vmem:[%s1186_s0 + $0x4c] ss:$12 sps:$4 sm:$0xff]   ;;  %v868_v32 = vld [vmem:[%s1186_s0 + $0x48] ss:$12 sps:$4 sm:$0xff]   ;;  %v869_v33 = vld [vmem:[%s1186_s0 + $0x50] ss:$12 sps:$4 sm:$0xff]  }
   0xc   :  { %726 = vmatprep.subr.bf16.mxu0 %v836_v6  ;;  %817 = vmatprep.subr.bf16.mxu1 %v836_v6  ;;  %v867_v31 = vld [vmem:[%s1186_s0 + $0x38] ss:$12 sps:$4 sm:$0xff]   ;;  %v872_v35 = vld [vmem:[%s1186_s0 + $0x68] ss:$12 sps:$4 sm:$0xff]   ;;  %v873_v36 = vld [vmem:[%s1186_s0 + $0x60] ss:$12 sps:$4 sm:$0xff]  }
   0xd   :  { %v870_v34 = vld [vmem:[%s1186_s0 + $0x64] ss:$12 sps:$4 sm:$0xff]   ;;  %v874_v37 = vld [vmem:[%s1186_s0 + $0x80] ss:$12 sps:$4 sm:$0xff]   ;;  %v875_v38 = vld [vmem:[%s1186_s0 + $0x7c] ss:$12 sps:$4 sm:$0xff]  }
   0xe   :  { %v877_v39 = vld [vmem:[%s1186_s0 + $0x98] ss:$12 sps:$4 sm:$0xff]   ;;  %v879_v41 = vld [vmem:[%s1186_s0 + $0xb0] ss:$12 sps:$4 sm:$0xff]   ;;  %v1109_v2 = vld [vmem:[%s1187_s2] ss:$0 sm:$0xff] }
   0xf   :  { %727 = vmatpush3.bf16.msra.mxu0 %v837_v7  ;;  %825 = vmatpush3.bf16.msra.mxu1 %v837_v7  ;;  %v878_v40 = vld [vmem:[%s1186_s0 + $0x78] ss:$12 sps:$4 sm:$0xff]  }
  0x10   :  { %728 = vmatprep.subr.bf16.mxu0 %v838_v8  ;;  %818 = vmatprep.subr.bf16.mxu1 %v838_v8 }
  0x13   :  { %729 = vmatpush3.bf16.msra.mxu0 %v839_v9  ;;  %826 = vmatpush3.bf16.msra.mxu1 %v839_v9 }
  0x14   :  { %730 = vmatprep.subr.bf16.mxu0 %v840_v10  ;;  %819 = vmatprep.subr.bf16.mxu1 %v840_v10 }
  0x17   :  { %731 = vmatpush3.bf16.msra.mxu0 %v841_v13  ;;  %827 = vmatpush3.bf16.msra.mxu1 %v841_v13 }
  0x18   :  { %732 = vmatprep.subr.bf16.mxu0 %v842_v14  ;;  %820 = vmatprep.subr.bf16.mxu1 %v842_v14 }
  0x1b   :  { %733 = vmatpush3.bf16.msra.mxu0 %v843_v15  ;;  %828 = vmatpush3.bf16.msra.mxu1 %v843_v15 }
  0x1c   :  { %734 = vmatprep.subr.bf16.mxu0 %v844_v16  ;;  %821 = vmatprep.subr.bf16.mxu1 %v844_v16 }
  0x1f   :  { %735 = vmatpush3.bf16.msra.mxu0 %v845_v17  ;;  %829 = vmatpush3.bf16.msra.mxu1 %v845_v17 }
  0x20   :  { %794 = vmatprep.subr.bf16.mxu1 %v852_v19 }
  0x22   :  { %376 = vmatmul.mubr.bf16.vlgmr.msra.gmra.mrb[0].mxu0 %v846_v18  ;;  %424 = vmatmul.mubr.bf16.vlgmr.msra.gmra.mrb[0].mxu1 %v849_v20 }
  0x23   :  { %795 = vmatpush3.bf16.msra.mxu1 %v852_v19  ;;  %383 = vmatprep.mubr.bf16.mxu0 %v853_v21 }
  0x24   :  { %431 = vmatprep.mubr.bf16.mxu1 %v855_v22  ;;  %796 = vmatprep.subr.bf16.mxu1 %v859_v23 }
  0x27   :  { %797 = vmatpush3.bf16.msra.mxu1 %v859_v23 }
  0x2a   :  { %384 = vmatmul.mubr.bf16.gmra.mrb[4].mxu0 %v857_v24  ;;  %432 = vmatmul.mubr.bf16.gmra.mrb[4].mxu1 %v858_v25 }
  0x2b   :  { %391 = vmatprep.mubr.bf16.mxu0 %v860_v26  ;;  %798 = vmatprep.mubr.msk.bf16.mxu1 %vm318_vm0, %v862_v27 }
  0x32   :  { %392 = vmatmul.mubr.bf16.gmra.mrb[8].mxu0 %v863_v28  ;;  %799 = vmatmul.mubr.msk.bf16.vlgmr.msra.gmra.mrb[8].mxu1 %vm318_vm0, %v864_v29 }
  0x33   :  { %399 = vmatprep.mubr.bf16.mxu0 %v865_v30  ;;  %802 = vmatprep.mubr.msk.bf16.mxu1 %vm318_vm0, %v867_v31 }
  0x3a   :  { %400 = vmatmul.mubr.bf16.gmra.mrb[12].mxu0 %v868_v32  ;;  %803 = vmatmul.mubr.msk.bf16.gmra.mrb[12].mxu1 %vm318_vm0, %v869_v33 }
  0x3b   :  { %407 = vmatprep.mubr.bf16.mxu0 %v870_v34  ;;  %806 = vmatprep.mubr.msk.bf16.mxu1 %vm318_vm0, %v872_v35 }
  0x42   :  { %408 = vmatmul.mubr.bf16.gmra.mrb[16].mxu0 %v873_v36  ;;  %807 = vmatmul.mubr.msk.bf16.gmra.mrb[16].mxu1 %vm318_vm0, %v874_v37 }
  0x43   :  { %415 = vmatprep.mubr.bf16.mxu0 %v875_v38  ;;  %810 = vmatprep.mubr.msk.bf16.mxu1 %vm318_vm0, %v877_v39 }
  0x4a   :  { %416 = vmatmul.mubr.bf16.gmra.mrb[20].mxu0 %v878_v40  ;;  %811 = vmatmul.mubr.msk.bf16.gmra.mrb[20].mxu1 %vm318_vm0, %v879_v41 }
  0xf5   :  { %v736_v42 = vpop.f32.mrb[0].mxu0  ;;  %v772_v43 = vpop.f32.mrb[0].mxu1 }
  0xf6   :  { %v737_v44 = vpop.f32.mrb[1].mxu0  ;;  %v773_v45 = vpop.f32.mrb[1].mxu1 }
  0xf7   :  { %v738_v46 = vadd.f32 %v737_v44, %v736_v42  ;;  %v739_v47 = vpop.f32.mrb[2].mxu0  ;;  %v1098_v48 = vadd.f32 %v773_v45, %v772_v43  ;;  %v775_v49 = vpop.f32.mrb[2].mxu1 }
  0xf8   :  { %v740_v50 = vpop.f32.mrb[3].mxu0  ;;  %v776_v51 = vpop.f32.mrb[3].mxu1 }
  0xf9   :  { %v741_v52 = vadd.f32 %v740_v50, %v739_v47  ;;  %v1100_v53 = vadd.f32 %v776_v51, %v775_v49  ;;  %v378_v6 = vadd.f32 %v738_v46, %v1109_v2 }
  0xfb   :  { %v381_v15 = vadd.f32 %v741_v52, %v1109_v2 }
  0xfd   :  { %v742_v54 = vpop.f32.mrb[4].mxu0  ;;  %v778_v55 = vpop.f32.mrb[4].mxu1 }
  0xfe   :  { %v743_v56 = vpop.f32.mrb[5].mxu0  ;;  %v779_v57 = vpop.f32.mrb[5].mxu1 }
  0xff   :  { %v744_v58 = vadd.f32 %v743_v56, %v742_v54  ;;  %v745_v59 = vpop.f32.mrb[6].mxu0  ;;  %v1102_v60 = vadd.f32 %v779_v57, %v778_v55  ;;  %v781_v61 = vpop.f32.mrb[6].mxu1 }
 0x100   :  { %v746_v62 = vpop.f32.mrb[7].mxu0  ;;  %v782_v63 = vpop.f32.mrb[7].mxu1 }
 0x101   :  { %v747_v0 = vadd.f32 %v746_v62, %v745_v59  ;;  %v1104_v1 = vadd.f32 %v782_v63, %v781_v61  ;;  %v386_v3 = vadd.f32 %v744_v58, %v1109_v2 }
 0x103   :  { %v389_v10 = vadd.f32 %v747_v0, %v1109_v2 }
 0x105   :  { %v748_v4 = vpop.f32.mrb[8].mxu0  ;;  %v800_v5 = vpop.f32.mrb[8].mxu1 }
 0x106   :  { %v483_v7 = vadd.f32 %v800_v5, %v386_v3  ;;  %v749_v8 = vpop.f32.mrb[9].mxu0  ;;  %v474_v9 = vpop.f32.mrb[9].mxu1 }
 0x107   :  { %v750_v11 = vadd.f32 %v749_v8, %v748_v4  ;;  %v475_v12 = vadd.f32 %v474_v9, %v378_v6  ;;  %v751_v13 = vpop.f32.mrb[10].mxu0  ;;  %v801_v14 = vpop.f32.mrb[10].mxu1  ;;  %v434_v9 = vadd.f32 %v1102_v60, %v1109_v2 }
 0x108   :  { %v706_v16 = vmul.f32 -1.442695, %v483_v7  ;;  %v486_v17 = vadd.f32 %v801_v14, %v389_v10  ;;  %v752_v18 = vpop.f32.mrb[11].mxu0  ;;  %v477_v19 = vpop.f32.mrb[11].mxu1 }
 0x109   :  { %v704_v20 = vmul.f32 -1.442695, %v475_v12  ;;  %v753_v21 = vadd.f32 %v752_v18, %v751_v13  ;;  %v478_v22 = vadd.f32 %v477_v19, %v381_v15  ;;  %v394_v27 = vadd.f32 %v750_v11, %v1109_v2 }
 0x10a   :  { %880 = vpow2.f32 %v706_v16  ;;  %v707_v23 = vmul.f32 -1.442695, %v486_v17  ;;  %v426_v15 = vadd.f32 %v1098_v48, %v1109_v2 }
 0x10b   :  { %882 = vpow2.f32 %v704_v20  ;;  %v705_v24 = vmul.f32 -1.442695, %v478_v22  ;;  %v397_v34 = vadd.f32 %v753_v21, %v1109_v2  ;;  %v437_v20 = vadd.f32 %v1104_v1, %v1109_v2 }
 0x10c   :  { %884 = vpow2.f32 %v707_v23  ;;  %v429_v21 = vadd.f32 %v1100_v53, %v1109_v2 }
 0x10d   :  { %886 = vpow2.f32 %v705_v24  ;;  %v754_v25 = vpop.f32.mrb[12].mxu0  ;;  %v804_v26 = vpop.f32.mrb[12].mxu1 }
 0x10e   :  { %v755_v28 = vpop.f32.mrb[13].mxu0  ;;  %v490_v29 = vpop.f32.mrb[13].mxu1 }
 0x10f   :  { %v756_v30 = vadd.f32 %v755_v28, %v754_v25  ;;  %v491_v31 = vadd.f32 %v490_v29, %v394_v27  ;;  %v757_v32 = vpop.f32.mrb[14].mxu0  ;;  %v805_v33 = vpop.f32.mrb[14].mxu1 }
 0x110   :  { %v758_v35 = vpop.f32.mrb[15].mxu0  ;;  %v493_v36 = vpop.f32.mrb[15].mxu1 }
 0x111   :  { %v402_v37 = vadd.f32 %v756_v30, %v1109_v2  ;;  %v708_v38 = vmul.f32 -1.442695, %v491_v31  ;;  %v759_v39 = vadd.f32 %v758_v35, %v757_v32  ;;  %v494_v40 = vadd.f32 %v493_v36, %v397_v34 }
 0x113   :  { %v499_v41 = vadd.f32 %v804_v26, %v402_v37  ;;  %888 = vpow2.f32 %v708_v38  ;;  %v405_v42 = vadd.f32 %v759_v39, %v1109_v2  ;;  %v709_v43 = vmul.f32 -1.442695, %v494_v40 }
 0x114   :  { %v881_v44 = vpop.eup %880 }
 0x115   :  { %v883_v45 = vpop.eup %882  ;;  %v587_v46 = vadd.f32 1.0, %v881_v44  ;;  %v502_v47 = vadd.f32 %v805_v33, %v405_v42  ;;  %890 = vpow2.f32 %v709_v43  ;;  %v760_v49 = vpop.f32.mrb[16].mxu0  ;;  %v710_v58 = vmul.f32 -1.442695, %v499_v41 }
 0x116   :  { %v1119_v50 = vpop.f32.mrb[16].mxu1  ;;  %v885_v51 = vpop.eup %884  ;;  %v585_v52 = vadd.f32 1.0, %v883_v45 }
 0x117   :  { %v761_v54 = vpop.f32.mrb[17].mxu0  ;;  %v506_v55 = vpop.f32.mrb[17].mxu1  ;;  %892 = vrcp.f32 %v587_v46  ;;  %v588_v57 = vadd.f32 1.0, %v885_v51  ;;  %v711_v0 = vmul.f32 -1.442695, %v502_v47 }
 0x118   :  { %v887_v56 = vpop.eup %886  ;;  %v762_v59 = vadd.f32 %v761_v54, %v760_v49  ;;  %v763_v61 = vpop.f32.mrb[18].mxu0  ;;  %894 = vrcp.f32 %v585_v52 }
 0x119   :  { %v1121_v62 = vpop.f32.mrb[18].mxu1  ;;  %v586_v63 = vadd.f32 1.0, %v887_v56  ;;  %v764_v3 = vpop.f32.mrb[19].mxu0  ;;  %896 = vrcp.f32 %v588_v57 }
 0x11a   :  { %v509_v4 = vpop.f32.mrb[19].mxu1  ;;  %v410_v5 = vadd.f32 %v762_v59, %v1109_v2  ;;  %v765_v6 = vadd.f32 %v764_v3, %v763_v61 }
 0x11b   :  { %898 = vrcp.f32 %v586_v63 }
 0x11c   :  { %900 = vpow2.f32 %v710_v58  ;;  %v507_v7 = vadd.f32 %v506_v55, %v410_v5  ;;  %v413_v8 = vadd.f32 %v765_v6, %v1109_v2 }
 0x11d   :  { %902 = vpow2.f32 %v711_v0  ;;  %v889_v10 = vpop.eup %888  ;;  %v766_v13 = vpop.f32.mrb[20].mxu0 }
 0x11e   :  { %v712_v11 = vmul.f32 -1.442695, %v507_v7  ;;  %v510_v12 = vadd.f32 %v509_v4, %v413_v8  ;;  %v812_v14 = vpop.f32.mrb[20].mxu1  ;;  %v589_v16 = vadd.f32 1.0, %v889_v10  ;;  %v767_v18 = vpop.f32.mrb[21].mxu0 }
 0x11f   :  { %v531_v17 = vadd.f32 %v812_v14, %v434_v9  ;;  %v522_v19 = vpop.f32.mrb[21].mxu1  ;;  %v891_v22 = vpop.eup %890  ;;  %v768_v23 = vadd.f32 %v767_v18, %v766_v13 }
 0x120   :  { %904 = vpow2.f32 %v712_v11  ;;  %v713_v60 = vmul.f32 -1.442695, %v510_v12  ;;  %v523_v24 = vadd.f32 %v522_v19, %v426_v15  ;;  %v769_v25 = vpop.f32.mrb[22].mxu0  ;;  %v813_v26 = vpop.f32.mrb[22].mxu1  ;;  %v590_v27 = vadd.f32 1.0, %v891_v22 }
 0x121   :  { %906 = vrcp.f32 %v589_v16  ;;  %v718_v48 = vmul.f32 -1.442695, %v531_v17  ;;  %v534_v28 = vadd.f32 %v813_v26, %v437_v20  ;;  %v770_v29 = vpop.f32.mrb[23].mxu0  ;;  %v525_v30 = vpop.f32.mrb[23].mxu1  ;;  %v418_v1 = vadd.f32 %v768_v23, %v1109_v2 }
 0x122   :  { %v893_v31 = vpop.eup %892  ;;  %908 = vpow2.f32 %v713_v60  ;;  %v716_v32 = vmul.f32 -1.442695, %v523_v24  ;;  %v771_v33 = vadd.f32 %v770_v29, %v769_v25  ;;  %v526_v35 = vadd.f32 %v525_v30, %v429_v21 }
 0x123   :  { %v895_v53 = vpop.eup %894  ;;  %635 = vst [vmem:[%s1188_s3 + $0x10] sm:$0xff] %v893_v31  ;;  %910 = vrcp.f32 %v590_v27  ;;  %v719_v34 = vmul.f32 -1.442695, %v534_v28  ;;  %v515_v37 = vadd.f32 %v1119_v50, %v418_v1 }
 0x124   :  { %v897_v36 = vpop.eup %896  ;;  %633 = vst [vmem:[%s1188_s3] sm:$0xff] %v895_v53  ;;  %912 = vpow2.f32 %v718_v48  ;;  %v421_v38 = vadd.f32 %v771_v33, %v1109_v2  ;;  %v717_v40 = vmul.f32 -1.442695, %v526_v35 }
 0x125   :  { %v899_v39 = vpop.eup %898  ;;  %636 = vst [vmem:[%s1188_s3 + $0x18] sm:$0xff] %v897_v36  ;;  %914 = vpow2.f32 %v716_v32  ;;  %v714_v42 = vmul.f32 -1.442695, %v515_v37 }
 0x126   :  { %v901_v41 = vpop.eup %900  ;;  %634 = vst [vmem:[%s1188_s3 + $0x8] sm:$0xff] %v899_v39  ;;  %916 = vpow2.f32 %v719_v34  ;;  %v518_v43 = vadd.f32 %v1121_v62, %v421_v38 }
 0x127   :  { %v903_v44 = vpop.eup %902  ;;  %v591_v45 = vadd.f32 1.0, %v901_v41  ;;  %918 = vpow2.f32 %v717_v40 }
 0x128   :  { %v592_v2 = vadd.f32 1.0, %v903_v44  ;;  %920 = vpow2.f32 %v714_v42  ;;  %v715_v46 = vmul.f32 -1.442695, %v518_v43 }
 0x129   :  { %922 = vrcp.f32 %v591_v45 }
 0x12a   :  { %v905_v47 = vpop.eup %904  ;;  %924 = vrcp.f32 %v592_v2 }
 0x12b   :  { %v907_v49 = vpop.eup %906  ;;  %v593_v50 = vadd.f32 1.0, %v905_v47  ;;  %926 = vpow2.f32 %v715_v46 }
 0x12c   :  { %v909_v51 = vpop.eup %908  ;;  %637 = vst [vmem:[%s1188_s3 + $0x20] sm:$0xff] %v907_v49 }
 0x12d   :  { %v911_v52 = vpop.eup %910  ;;  %928 = vrcp.f32 %v593_v50  ;;  %v594_v54 = vadd.f32 1.0, %v909_v51 }
 0x12e   :  { %v913_v55 = vpop.eup %912  ;;  %638 = vst [vmem:[%s1188_s3 + $0x28] sm:$0xff] %v911_v52 }
 0x12f   :  { %v915_v56 = vpop.eup %914  ;;  %930 = vrcp.f32 %v594_v54  ;;  %v599_v57 = vadd.f32 1.0, %v913_v55 }
 0x130   :  { %v917_v58 = vpop.eup %916  ;;  %v597_v59 = vadd.f32 1.0, %v915_v56 }
 0x131   :  { %v919_v61 = vpop.eup %918  ;;  %932 = vrcp.f32 %v599_v57  ;;  %v600_v62 = vadd.f32 1.0, %v917_v58 }
 0x132   :  { %v921_v63 = vpop.eup %920  ;;  %934 = vrcp.f32 %v597_v59  ;;  %v598_v0 = vadd.f32 1.0, %v919_v61 }
 0x133   :  { %v923_v3 = vpop.eup %922  ;;  %v595_v4 = vadd.f32 1.0, %v921_v63  ;;  %936 = vrcp.f32 %v600_v62 }
 0x134   :  { %v925_v5 = vpop.eup %924  ;;  %639 = vst [vmem:[%s1188_s3 + $0x30] sm:$0xff] %v923_v3  ;;  %938 = vrcp.f32 %v598_v0 }
 0x135   :  { %v927_v6 = vpop.eup %926  ;;  %640 = vst [vmem:[%s1188_s3 + $0x38] sm:$0xff] %v925_v5  ;;  %940 = vrcp.f32 %v595_v4 }
 0x136   :  { %v596_v7 = vadd.f32 1.0, %v927_v6 }
 0x137   :  { %v929_v8 = vpop.eup %928 }
 0x138   :  { %641 = vst [vmem:[%s1188_s3 + $0x40] sm:$0xff] %v929_v8  ;;  %942 = vrcp.f32 %v596_v7 }
 0x139   :  { %v931_v9 = vpop.eup %930 }
 0x13a   :  { %642 = vst [vmem:[%s1188_s3 + $0x48] sm:$0xff] %v931_v9 }
 0x13b   :  { %v933_v10 = vpop.eup %932 }
 0x13c   :  { %v935_v11 = vpop.eup %934  ;;  %647 = vst [vmem:[%s1188_s3 + $0x70] sm:$0xff] %v933_v10 }
 0x13d   :  { %v937_v12 = vpop.eup %936  ;;  %645 = vst [vmem:[%s1188_s3 + $0x60] sm:$0xff] %v935_v11 }
 0x13e   :  { %v939_v13 = vpop.eup %938  ;;  %648 = vst [vmem:[%s1188_s3 + $0x78] sm:$0xff] %v937_v12 }
 0x13f   :  { %v941_v14 = vpop.eup %940  ;;  %646 = vst [vmem:[%s1188_s3 + $0x68] sm:$0xff] %v939_v13 }
 0x140   :  { %643 = vst [vmem:[%s1188_s3 + $0x50] sm:$0xff] %v941_v14 }
 0x142   :  { %v943_v15 = vpop.eup %942 }
 0x143   :  { %644 = vst [vmem:[%s1188_s3 + $0x58] sm:$0xff] %v943_v15 }

</bundles_post_ra>
